<compile_context>
chip_gen: v7x
topology: tpu7x:2x2x1
jax: 0.10.0
libtpu: 0.0.40
codegen_flags: <defaults>
</compile_context>

<pallas_src>
import functools

import jax
import jax.numpy as jnp
from jax.experimental import pallas as pl
from jax.experimental.pallas import tpu as pltpu


LN_EPS = 1e-5
_LANE = 128
_SUBLANE = 8
_INV_SQRT2 = 0.7071067811865476
_SQRT_2_OVER_PI = 0.7978845608028654


def _round_up(n, m):
    return ((n + m - 1) // m) * m


def _gelu(x, approximate):
    if approximate:
        # tanh approximation lowers to the EUP slot (cheap filler) instead of a
        # long VALU erf polynomial. Opt-in: deviates slightly from exact GELU.
        return 0.5 * x * (1.0 + jnp.tanh(_SQRT_2_OVER_PI * (x + 0.044715 * x * x * x)))
    # nn.GELU() default = exact erf formulation.
    return 0.5 * x * (1.0 + jax.lax.erf(x * _INV_SQRT2))


def self_attention_kernel(
    x_ref,
    ln1_g_ref, ln1_b_ref,
    ln2_g_ref, ln2_b_ref,
    wq_ref, bq_ref,
    wk_ref, bk_ref,
    wv_ref, bv_ref,
    wo_ref, bo_ref,
    w1_ref, b1_ref,
    w2_ref, b2_ref,
    out_ref,
    x1_scr, x1n_scr, ff_scr,
    *, block_b, seq_len, true_c, compute_dtype, approx_recip, gelu_approx,
):
    f32 = jnp.float32
    fi = pl.program_id(1)
    nf = pl.num_programs(1)

    rows, cp = x1_scr.shape
    if true_c != cp:
        lane_mask = jax.lax.broadcasted_iota(jnp.int32, (1, cp), 1) < true_c
    else:
        lane_mask = None
    inv_c = 1.0 / float(true_c)

    def layer_norm(v, g, b):
        # PyTorch LayerNorm: biased variance, eps inside rsqrt.  Padded lanes
        # of v are exactly zero, so the lane sum equals the true-lane sum; the
        # mask only has to zero the (x - mean) term on padded lanes.
        mean = jnp.sum(v, axis=-1, keepdims=True) * inv_c
        diff = v - mean
        if lane_mask is not None:
            diff = jnp.where(lane_mask, diff, 0.0)
        var = jnp.sum(diff * diff, axis=-1, keepdims=True) * inv_c
        inv = jax.lax.rsqrt(var + LN_EPS)
        return diff * inv * g + b

    # ---------- phase 1 (f == 0): LayerNorm1 + attention + residual + LN2 ----
    @pl.when(fi == 0)
    def _attention_phase():
        x = x_ref[...].astype(f32)                              # (R, Cp)
        x_norm = layer_norm(x, ln1_g_ref[...], ln1_b_ref[...])
        xn_c = x_norm.astype(compute_dtype)                     # cast once, reuse for Q/K/V

        # Softmax scale is already folded into Wq / bq by the wrapper.
        q = jnp.dot(xn_c, wq_ref[...], preferred_element_type=f32) + bq_ref[...]
        k = jnp.dot(xn_c, wk_ref[...], preferred_element_type=f32) + bk_ref[...]
        v = jnp.dot(xn_c, wv_ref[...], preferred_element_type=f32) + bv_ref[...]

        qk_p = q.shape[-1]
        v_p = v.shape[-1]
        qb = q.reshape(block_b, seq_len, qk_p).astype(compute_dtype)
        kb = k.reshape(block_b, seq_len, qk_p).astype(compute_dtype)
        vb = v.reshape(block_b, seq_len, v_p).astype(compute_dtype)

        # Batched q @ k^T without materializing k.T (no batch mixing).
        scores = jax.lax.dot_general(
            qb, kb,
            dimension_numbers=(((2,), (2,)), ((0,), (0,))),
            preferred_element_type=f32)                          # (Bb, M, M)
        scores = scores - jnp.max(scores, axis=-1, keepdims=True)
        p = jnp.exp(scores)
        p = p * pl.reciprocal(jnp.sum(p, axis=-1, keepdims=True),
                              approx=approx_recip)

        weighted = jax.lax.dot_general(
            p.astype(compute_dtype), vb,
            dimension_numbers=(((2,), (1,)), ((0,), (0,))),
            preferred_element_type=f32).reshape(rows, v_p)       # (R, Vp)

        attn_out = jnp.dot(weighted.astype(compute_dtype), wo_ref[...],
                           preferred_element_type=f32) + bo_ref[...]

        x1 = x + attn_out                                        # first residual
        x1_scr[...] = x1
        x1n_scr[...] = layer_norm(
            x1, ln2_g_ref[...], ln2_b_ref[...]).astype(compute_dtype)
        ff_scr[...] = jnp.zeros_like(ff_scr)

    # ---------- phase 2 (every f): one F-chunk of the FFN --------------------
    h = jnp.dot(x1n_scr[...], w1_ref[...],
                preferred_element_type=f32) + b1_ref[...]        # (R, f_block)
    h = _gelu(h, gelu_approx)
    ff_scr[...] += jnp.dot(h.astype(compute_dtype), w2_ref[...],
                           preferred_element_type=f32)           # (R, Cp)

    # ---------- finalize (last f): second residual + store -------------------
    @pl.when(fi == nf - 1)
    def _finalize():
        out_ref[...] = (x1_scr[...] + ff_scr[...] + b2_ref[...]).astype(out_ref.dtype)


def _pad2d(a, shape):
    pads = tuple((0, t - s) for s, t in zip(a.shape, shape))
    if any(p[1] for p in pads):
        return jnp.pad(a, pads)
    return a


def _pick_block_batch(batch, seq, target_rows, row_mult, min_grid):
    """Largest batch block whose flattened rows fit `target_rows`, preferring
    >= min_grid parallel grid steps (v7x has 2 TensorCores) and a row block
    that is a multiple of `row_mult` (16 for packed sub-32-bit dtypes)."""
    base = [bb for bb in range(1, batch + 1)
            if batch % bb == 0 and ((bb * seq) % _SUBLANE == 0 or bb == batch)]
    if not base:
        base = [batch]
    preferred = [bb for bb in base if (bb * seq) % row_mult == 0 or bb == batch]
    cands = preferred or base

    def ok_rows(bb):
        return bb * seq <= target_rows

    def ok_grid(bb):
        return (batch // bb) >= min_grid

    best = [bb for bb in cands if ok_rows(bb) and ok_grid(bb)]
    if best:
        return max(best)
    best = [bb for bb in cands if ok_rows(bb)]
    if best:
        return max(best)
    return min(cands)


def _vmem_capacity_bytes():
    try:
        return int(pltpu.get_tpu_info().vmem_capacity_bytes)
    except Exception:
        return 64 * 1024 * 1024        # conservative (v7x per-TC) fallback


def self_attention_forward(
    x, params, *,
    compute_dtype=jnp.bfloat16,
    target_rows=512,
    min_grid_steps=2,
    single_buffer_weights=True,
    ffn_block=None,
    gelu_approx=False,
):
    """Fused SelfAttention forward.

    x: (B, M, C) float32 (bf16 also accepted; residual adds stay f32 in-kernel).
    params: dict of weights, Linear weights as (in, out).
    compute_dtype: dtype fed to the MXU for the six big matmuls (accumulation
      is always f32; LayerNorm / softmax / GELU always run in f32).
    ffn_block: optional F-chunk size for streaming W1/W2 (auto if None).
    """
    B, M, C = x.shape
    # Guard the lane-padding invariant: params must be the true (unpadded) shapes.
    assert params["ln1_g"].shape[-1] == C and params["ln2_g"].shape[-1] == C
    assert params["wq"].shape[0] == C and params["wk"].shape[0] == C
    assert params["wv"].shape[0] == C and params["wo"].shape[1] == C
    assert params["w1"].shape[0] == C and params["w2"].shape[1] == C

    qk_out = params["wq"].shape[1]
    v_out = params["wv"].shape[1]
    ffh = params["w1"].shape[1]
    scale = float(qk_out) ** (-0.5)     # num_heads=1 -> qk_head_dim == qk_out

    # Lane-dense padded dims (multiples of 128).
    cp = _round_up(C, _LANE)
    qkp = _round_up(qk_out, _LANE)
    vp = _round_up(v_out, _LANE)
    fp = _round_up(ffh, _LANE)

    f32 = jnp.float32
    cdt = jnp.dtype(compute_dtype)
    cdt_size = cdt.itemsize
    out_itemsize = jnp.dtype(x.dtype).itemsize

    # Fold the softmax scale into the Q projection (zero in-kernel cost).
    wq = params["wq"] * scale
    bq = params["bq"] * scale

    def prep_w(w, shape):
        return _pad2d(w, shape).astype(compute_dtype)

    def prep_b(b, shape):
        return _pad2d(b.reshape(1, -1), shape).astype(f32)

    args = [
        prep_b(params["ln1_g"], (1, cp)), prep_b(params["ln1_b"], (1, cp)),
        prep_b(params["ln2_g"], (1, cp)), prep_b(params["ln2_b"], (1, cp)),
        prep_w(wq, (cp, qkp)), prep_b(bq, (1, qkp)),
        prep_w(params["wk"], (cp, qkp)), prep_b(params["bk"], (1, qkp)),
        prep_w(params["wv"], (cp, vp)), prep_b(params["bv"], (1, vp)),
        prep_w(params["wo"], (vp, cp)), prep_b(params["bo"], (1, cp)),
        prep_w(params["w1"], (cp, fp)), prep_b(params["b1"], (1, fp)),
        prep_w(params["w2"], (fp, cp)), prep_b(params["b2"], (1, cp)),
    ]
    # Everything except w1 (idx 12), b1 (13), w2 (14) has a constant index_map.
    const_idx = [i for i in range(len(args)) if i not in (12, 13, 14)]
    const_bytes = sum(args[i].size * args[i].dtype.itemsize for i in const_idx)

    # Flattened, lane-padded activations: (B*M, Cp), residual stream in f32.
    x_pad = _pad2d(x.reshape(B * M, C).astype(f32), (B * M, cp))

    row_mult = 16 if cdt_size < 4 else _SUBLANE
    block_b = _pick_block_batch(B, M, target_rows, row_mult, min_grid_steps)
    rows = block_b * M
    gb = B // block_b

    # ---- generation-aware VMEM budgeting ------------------------------------
    vmem_cap = _vmem_capacity_bytes()
    budget = vmem_cap - 8 * 1024 * 1024              # ~8 MiB headroom

    def vmem_need(fb):
        wbuf = 1 if single_buffer_weights else 2
        need = wbuf * const_bytes
        need += 2 * (cp * fb + fb * cp) * cdt_size + 2 * fb * 4    # w1/w2/b1 chunks (dbl-buf)
        need += 2 * rows * cp * 4 + 2 * rows * cp * out_itemsize   # x / out tiles
        need += rows * cp * (8 + cdt_size)                         # x1 / x1n / ff scratch
        need += rows * (2 * cp + 2 * qkp + vp + 2 * fb) * 4        # f32 temporaries
        need += 2 * block_b * M * M * 4                            # scores / probs
        return int(need * 1.15)

    if ffn_block is not None:
        fb = min(max(_LANE, _round_up(int(ffn_block), _LANE)), fp)
        while fp % fb:
            fb -= _LANE
        f_block = fb
    else:
        f_block = _LANE
        for cand in range(fp, 0, -_LANE):
            if fp % cand == 0 and vmem_need(cand) <= budget:
                f_block = cand
                break
    nf = fp // f_block

    vmem_limit = int(min(max(vmem_need(f_block), 32 * 1024 * 1024), budget))

    # ---- BlockSpecs ----------------------------------------------------------
    def const_spec(shape):
        idx = lambda i, f: (0,) * len(shape)
        if single_buffer_weights:
            # Constant index_map -> one VMEM buffer is enough (halves the
            # resident weight footprint; mandatory headroom on v7x's 64 MiB).
            return pl.BlockSpec(shape, idx, pipeline_mode=pl.Buffered(1))
        return pl.BlockSpec(shape, idx)

    in_specs = [pl.BlockSpec((rows, cp), lambda i, f: (i, 0))]
    for i, a in enumerate(args):
        if i == 12:      # w1: (Cp, Fp) blocked along F
            in_specs.append(pl.BlockSpec((cp, f_block), lambda i_, f: (0, f)))
        elif i == 13:    # b1: (1, Fp) blocked along F
            in_specs.append(pl.BlockSpec((1, f_block), lambda i_, f: (0, f)))
        elif i == 14:    # w2: (Fp, Cp) blocked along F
            in_specs.append(pl.BlockSpec((f_block, cp), lambda i_, f: (f, 0)))
        else:
            in_specs.append(const_spec(a.shape))

    kernel = functools.partial(
        self_attention_kernel,
        block_b=block_b,
        seq_len=M,
        true_c=C,
        compute_dtype=compute_dtype,
        approx_recip=(cdt != jnp.dtype(jnp.float32)),
        gelu_approx=gelu_approx,
    )

    out2d = pl.pallas_call(
        kernel,
        out_shape=jax.ShapeDtypeStruct((B * M, cp), x.dtype),
        grid=(gb, nf),
        in_specs=in_specs,
        out_specs=pl.BlockSpec((rows, cp), lambda i, f: (i, 0)),
        scratch_shapes=[
            pltpu.VMEM((rows, cp), jnp.float32),     # x1 (first residual)
            pltpu.VMEM((rows, cp), compute_dtype),   # LayerNorm2(x1), pre-cast
            pltpu.VMEM((rows, cp), jnp.float32),     # FFN accumulator
        ],
        compiler_params=pltpu.CompilerParams(
            dimension_semantics=("parallel", "arbitrary"),
            vmem_limit_bytes=vmem_limit,
        ),
    )(x_pad, *args)

    return out2d.reshape(B, M, cp)[:, :, :C]


def init_params(key, hidden_dim, widening_factor=4):
    """Deterministic parameter init. Linear weights stored as (in, out)."""
    ks = jax.random.split(key, 6)
    ffh = hidden_dim * widening_factor

    def lin(k, fan_in, fan_out):
        # uniform(-1/sqrt(fan_in), 1/sqrt(fan_in)) like torch.nn.Linear
        lim = 1.0 / jnp.sqrt(fan_in)
        kw, kb = jax.random.split(k)
        w = jax.random.uniform(kw, (fan_in, fan_out), jnp.float32, -lim, lim)
        b = jax.random.uniform(kb, (1, fan_out), jnp.float32, -lim, lim)
        return w, b

    wq, bq = lin(ks[0], hidden_dim, hidden_dim)
    wk, bk = lin(ks[1], hidden_dim, hidden_dim)
    wv, bv = lin(ks[2], hidden_dim, hidden_dim)
    wo, bo = lin(ks[3], hidden_dim, hidden_dim)
    w1, b1 = lin(ks[4], hidden_dim, ffh)
    w2, b2 = lin(ks[5], ffh, hidden_dim)

    return dict(
        ln1_g=jnp.ones((1, hidden_dim), jnp.float32),
        ln1_b=jnp.zeros((1, hidden_dim), jnp.float32),
        ln2_g=jnp.ones((1, hidden_dim), jnp.float32),
        ln2_b=jnp.zeros((1, hidden_dim), jnp.float32),
        wq=wq, bq=bq, wk=wk, bk=bk, wv=wv, bv=bv, wo=wo, bo=bo,
        w1=w1, b1=b1, w2=w2, b2=b2,
    )


def self_attention_ref(x, params):
    """Pure-JAX reference matching the PyTorch forward (dropout=0, no mask)."""
    def ln(x, g, b):
        m = jnp.mean(x, -1, keepdims=True)
        v = jnp.mean((x - m) ** 2, -1, keepdims=True)
        return (x - m) / jnp.sqrt(v + LN_EPS) * g + b

    xn = ln(x, params["ln1_g"], params["ln1_b"])
    q = xn @ params["wq"] + params["bq"]
    k = xn @ params["wk"] + params["bk"]
    v = xn @ params["wv"] + params["bv"]
    scale = params["wq"].shape[1] ** (-0.5)
    att = jax.nn.softmax(jnp.einsum("bnd,bmd->bnm", q, k) * scale, axis=-1)
    w = jnp.einsum("bnm,bmd->bnd", att, v)
    attn_out = w @ params["wo"] + params["bo"]
    x1 = x + attn_out
    x1n = ln(x1, params["ln2_g"], params["ln2_b"])
    h = jax.nn.gelu(x1n @ params["w1"] + params["b1"], approximate=False)
    ff = h @ params["w2"] + params["b2"]
    return x1 + ff


if __name__ == "__main__":
    key = jax.random.PRNGKey(0)
    k1, k2, k3, k4 = jax.random.split(key, 4)

    # ---- case 1: tiny SelfAttention block (PerceiverLM latent transformer) ---
    B, M, C = 2, 8, 32
    x = jax.random.normal(k1, (B, M, C), jnp.float32)
    params = init_params(k2, C, widening_factor=4)
    ref = self_attention_ref(x, params)

    # f32 MXU path: exact semantics, tight tolerance.
    out_f32 = jax.block_until_ready(
        self_attention_forward(x, params, compute_dtype=jnp.float32))
    assert out_f32.shape == (B, M, C)
    err32 = float(jnp.max(jnp.abs(out_f32 - ref)))
    assert jnp.allclose(out_f32, ref, atol=2e-3, rtol=2e-3), (
        f"f32 path max abs err = {err32}")

    # bf16 MXU path (f32 accumulation): perf mode, looser tolerance.
    out_bf16 = jax.block_until_ready(
        self_attention_forward(x, params, compute_dtype=jnp.bfloat16))
    assert out_bf16.shape == (B, M, C)
    errbf = float(jnp.max(jnp.abs(out_bf16 - ref)))
    assert jnp.allclose(out_bf16, ref, atol=1e-1, rtol=1e-1), (
        f"bf16 path max abs err = {errbf}")

    # ---- case 2: exercise the F-chunked FFN path (nf = 2) + 2-step grid ------
    B2, M2, C2 = 2, 16, 128
    x2 = jax.random.normal(k3, (B2, M2, C2), jnp.float32)
    params2 = init_params(k4, C2, widening_factor=4)      # ffh = 512
    ref2 = self_attention_ref(x2, params2)

    out2 = jax.block_until_ready(
        self_attention_forward(x2, params2, compute_dtype=jnp.float32,
                               ffn_block=256))            # 512 // 256 = 2 chunks
    assert out2.shape == (B2, M2, C2)
    err2 = float(jnp.max(jnp.abs(out2 - ref2)))
    assert jnp.allclose(out2, ref2, atol=5e-3, rtol=5e-3), (
        f"chunked-FFN f32 path max abs err = {err2}")

    print("KERNEL_OK")
</pallas_src>

<mosaic_0001>
module attributes {stable_mosaic.version = 11 : i64} {
  func.func @self_attention_kernel(%arg0: i32, %arg1: i32, %arg2: memref<8x128xf32, #tpu.memory_space<vmem>>, %arg3: memref<1x128xf32, #tpu.memory_space<vmem>>, %arg4: memref<1x128xf32, #tpu.memory_space<vmem>>, %arg5: memref<1x128xf32, #tpu.memory_space<vmem>>, %arg6: memref<1x128xf32, #tpu.memory_space<vmem>>, %arg7: memref<128x128xf32, #tpu.memory_space<vmem>>, %arg8: memref<1x128xf32, #tpu.memory_space<vmem>>, %arg9: memref<128x128xf32, #tpu.memory_space<vmem>>, %arg10: memref<1x128xf32, #tpu.memory_space<vmem>>, %arg11: memref<128x128xf32, #tpu.memory_space<vmem>>, %arg12: memref<1x128xf32, #tpu.memory_space<vmem>>, %arg13: memref<128x128xf32, #tpu.memory_space<vmem>>, %arg14: memref<1x128xf32, #tpu.memory_space<vmem>>, %arg15: memref<128x128xf32, #tpu.memory_space<vmem>>, %arg16: memref<1x128xf32, #tpu.memory_space<vmem>>, %arg17: memref<128x128xf32, #tpu.memory_space<vmem>>, %arg18: memref<1x128xf32, #tpu.memory_space<vmem>>, %arg19: memref<8x128xf32, #tpu.memory_space<vmem>>, %arg20: memref<8x128xf32, #tpu.memory_space<vmem>>, %arg21: memref<8x128xf32, #tpu.memory_space<vmem>>, %arg22: memref<8x128xf32, #tpu.memory_space<vmem>>) attributes {dimension_semantics = [#tpu.dimension_semantics<parallel>, #tpu.dimension_semantics<arbitrary>], iteration_bounds = array<i64: 2, 1>, scalar_prefetch = 0 : i64, scratch_operands = 3 : i64, tpu.core_type = #tpu.core_type<tc>, window_params = [{transform_indices = @transform_0, window_bounds = array<i64: 8, 128>}, {pipeline_mode = #tpu.pipeline_mode<synchronous>, transform_indices = @transform_1, window_bounds = array<i64: 1, 128>}, {pipeline_mode = #tpu.pipeline_mode<synchronous>, transform_indices = @transform_2, window_bounds = array<i64: 1, 128>}, {pipeline_mode = #tpu.pipeline_mode<synchronous>, transform_indices = @transform_3, window_bounds = array<i64: 1, 128>}, {pipeline_mode = #tpu.pipeline_mode<synchronous>, transform_indices = @transform_4, window_bounds = array<i64: 1, 128>}, {pipeline_mode = #tpu.pipeline_mode<synchronous>, transform_indices = @transform_5, window_bounds = array<i64: 128, 128>}, {pipeline_mode = #tpu.pipeline_mode<synchronous>, transform_indices = @transform_6, window_bounds = array<i64: 1, 128>}, {pipeline_mode = #tpu.pipeline_mode<synchronous>, transform_indices = @transform_7, window_bounds = array<i64: 128, 128>}, {pipeline_mode = #tpu.pipeline_mode<synchronous>, transform_indices = @transform_8, window_bounds = array<i64: 1, 128>}, {pipeline_mode = #tpu.pipeline_mode<synchronous>, transform_indices = @transform_9, window_bounds = array<i64: 128, 128>}, {pipeline_mode = #tpu.pipeline_mode<synchronous>, transform_indices = @transform_10, window_bounds = array<i64: 1, 128>}, {pipeline_mode = #tpu.pipeline_mode<synchronous>, transform_indices = @transform_11, window_bounds = array<i64: 128, 128>}, {pipeline_mode = #tpu.pipeline_mode<synchronous>, transform_indices = @transform_12, window_bounds = array<i64: 1, 128>}, {transform_indices = @transform_13, window_bounds = array<i64: 128, 128>}, {transform_indices = @transform_14, window_bounds = array<i64: 1, 128>}, {transform_indices = @transform_15, window_bounds = array<i64: 128, 128>}, {pipeline_mode = #tpu.pipeline_mode<synchronous>, transform_indices = @transform_16, window_bounds = array<i64: 1, 128>}, {transform_indices = @transform_17, window_bounds = array<i64: 8, 128>}]} {
    %0 = tpu.iota {dimensions = array<i32: 1>} : vector<1x128xi32>
    %c32_i32 = arith.constant 32 : i32
    %1 = vector.broadcast %c32_i32 : i32 to vector<1x128xi32>
    %2 = arith.cmpi slt, %0, %1 : vector<1x128xi32>
    %c0_i32 = arith.constant 0 : i32
    %3 = arith.cmpi eq, %arg1, %c0_i32 : i32
    %4 = arith.extui %3 : i1 to i32
    %c0_i32_0 = arith.constant 0 : i32
    %5 = arith.cmpi ne, %4, %c0_i32_0 : i32
    scf.if %5 {
      %c0_18 = arith.constant 0 : index
      %c0_19 = arith.constant 0 : index
      %28 = vector.load %arg2[%c0_18, %c0_19] : memref<8x128xf32, #tpu.memory_space<vmem>>, vector<8x128xf32>
      %c0_20 = arith.constant 0 : index
      %c0_21 = arith.constant 0 : index
      %29 = vector.load %arg3[%c0_20, %c0_21] : memref<1x128xf32, #tpu.memory_space<vmem>>, vector<1x128xf32>
      %c0_22 = arith.constant 0 : index
      %c0_23 = arith.constant 0 : index
      %30 = vector.load %arg4[%c0_22, %c0_23] : memref<1x128xf32, #tpu.memory_space<vmem>>, vector<1x128xf32>
      %cst_24 = arith.constant dense<0.000000e+00> : vector<8xf32>
      %31 = vector.multi_reduction <add>, %28, %cst_24 [1] : vector<8x128xf32> to vector<8xf32>
      %32 = vector.shape_cast %31 : vector<8xf32> to vector<8x1xf32>
      %cst_25 = arith.constant 3.125000e-02 : f32
      %33 = vector.broadcast %cst_25 : f32 to vector<8x1xf32>
      %34 = arith.mulf %32, %33 : vector<8x1xf32>
      %35 = vector.broadcast %34 : vector<8x1xf32> to vector<8x128xf32>
      %36 = arith.subf %28, %35 : vector<8x128xf32>
      %cst_26 = arith.constant 0.000000e+00 : f32
      %37 = vector.shape_cast %2 : vector<1x128xi1> to vector<1x128xi1>
      %38 = vector.broadcast %37 : vector<1x128xi1> to vector<8x128xi1>
      %39 = vector.broadcast %cst_26 : f32 to vector<8x128xf32>
      %40 = arith.select %38, %36, %39 : vector<8x128xi1>, vector<8x128xf32>
      %41 = arith.mulf %40, %40 : vector<8x128xf32>
      %cst_27 = arith.constant dense<0.000000e+00> : vector<8xf32>
      %42 = vector.multi_reduction <add>, %41, %cst_27 [1] : vector<8x128xf32> to vector<8xf32>
      %43 = vector.shape_cast %42 : vector<8xf32> to vector<8x1xf32>
      %cst_28 = arith.constant 3.125000e-02 : f32
      %44 = vector.broadcast %cst_28 : f32 to vector<8x1xf32>
      %45 = arith.mulf %43, %44 : vector<8x1xf32>
      %cst_29 = arith.constant 9.99999974E-6 : f32
      %46 = vector.broadcast %cst_29 : f32 to vector<8x1xf32>
      %47 = arith.addf %45, %46 : vector<8x1xf32>
      %48 = math.rsqrt %47 : vector<8x1xf32>
      %49 = vector.broadcast %48 : vector<8x1xf32> to vector<8x128xf32>
      %50 = arith.mulf %40, %49 : vector<8x128xf32>
      %51 = vector.broadcast %29 : vector<1x128xf32> to vector<8x128xf32>
      %52 = arith.mulf %50, %51 : vector<8x128xf32>
      %53 = vector.broadcast %30 : vector<1x128xf32> to vector<8x128xf32>
      %54 = arith.addf %52, %53 : vector<8x128xf32>
      %c0_30 = arith.constant 0 : index
      %c0_31 = arith.constant 0 : index
      %55 = vector.load %arg7[%c0_30, %c0_31] : memref<128x128xf32, #tpu.memory_space<vmem>>, vector<128x128xf32>
      %cst_32 = arith.constant dense<0.000000e+00> : vector<8x128xf32>
      %56 = tpu.matmul %54, %55, %cst_32 {dimension_numbers = #tpu.dot_dimension_numbers<[1], [0], [0], [1], [0, 0, 1, 1], [], []>} : vector<8x128xf32>, vector<128x128xf32>, vector<8x128xf32> -> vector<8x128xf32>
      %c0_33 = arith.constant 0 : index
      %c0_34 = arith.constant 0 : index
      %57 = vector.load %arg8[%c0_33, %c0_34] : memref<1x128xf32, #tpu.memory_space<vmem>>, vector<1x128xf32>
      %58 = vector.broadcast %57 : vector<1x128xf32> to vector<8x128xf32>
      %59 = arith.addf %56, %58 : vector<8x128xf32>
      %c0_35 = arith.constant 0 : index
      %c0_36 = arith.constant 0 : index
      %60 = vector.load %arg9[%c0_35, %c0_36] : memref<128x128xf32, #tpu.memory_space<vmem>>, vector<128x128xf32>
      %cst_37 = arith.constant dense<0.000000e+00> : vector<8x128xf32>
      %61 = tpu.matmul %54, %60, %cst_37 {dimension_numbers = #tpu.dot_dimension_numbers<[1], [0], [0], [1], [0, 0, 1, 1], [], []>} : vector<8x128xf32>, vector<128x128xf32>, vector<8x128xf32> -> vector<8x128xf32>
      %c0_38 = arith.constant 0 : index
      %c0_39 = arith.constant 0 : index
      %62 = vector.load %arg10[%c0_38, %c0_39] : memref<1x128xf32, #tpu.memory_space<vmem>>, vector<1x128xf32>
      %63 = vector.broadcast %62 : vector<1x128xf32> to vector<8x128xf32>
      %64 = arith.addf %61, %63 : vector<8x128xf32>
      %c0_40 = arith.constant 0 : index
      %c0_41 = arith.constant 0 : index
      %65 = vector.load %arg11[%c0_40, %c0_41] : memref<128x128xf32, #tpu.memory_space<vmem>>, vector<128x128xf32>
      %cst_42 = arith.constant dense<0.000000e+00> : vector<8x128xf32>
      %66 = tpu.matmul %54, %65, %cst_42 {dimension_numbers = #tpu.dot_dimension_numbers<[1], [0], [0], [1], [0, 0, 1, 1], [], []>} : vector<8x128xf32>, vector<128x128xf32>, vector<8x128xf32> -> vector<8x128xf32>
      %c0_43 = arith.constant 0 : index
      %c0_44 = arith.constant 0 : index
      %67 = vector.load %arg12[%c0_43, %c0_44] : memref<1x128xf32, #tpu.memory_space<vmem>>, vector<1x128xf32>
      %68 = vector.broadcast %67 : vector<1x128xf32> to vector<8x128xf32>
      %69 = arith.addf %66, %68 : vector<8x128xf32>
      %70 = vector.shape_cast %59 : vector<8x128xf32> to vector<1x8x128xf32>
      %71 = vector.shape_cast %64 : vector<8x128xf32> to vector<1x8x128xf32>
      %72 = vector.shape_cast %69 : vector<8x128xf32> to vector<1x8x128xf32>
      %cst_45 = arith.constant dense<0.000000e+00> : vector<1x8x8xf32>
      %73 = tpu.matmul %70, %71, %cst_45 {dimension_numbers = #tpu.dot_dimension_numbers<[2], [2], [1], [1], [0, 0, 0, 1, 1, 1], [0], [0]>} : vector<1x8x128xf32>, vector<1x8x128xf32>, vector<1x8x8xf32> -> vector<1x8x8xf32>
      %cst_46 = arith.constant dense<0xFF800000> : vector<1x8xf32>
      %74 = vector.multi_reduction <maximumf>, %73, %cst_46 [2] : vector<1x8x8xf32> to vector<1x8xf32>
      %75 = vector.shape_cast %74 : vector<1x8xf32> to vector<1x8x1xf32>
      %76 = vector.broadcast %75 : vector<1x8x1xf32> to vector<1x8x8xf32>
      %77 = arith.subf %73, %76 : vector<1x8x8xf32>
      %78 = math.exp %77 : vector<1x8x8xf32>
      %cst_47 = arith.constant dense<0.000000e+00> : vector<1x8xf32>
      %79 = vector.multi_reduction <add>, %78, %cst_47 [2] : vector<1x8x8xf32> to vector<1x8xf32>
      %80 = vector.shape_cast %79 : vector<1x8xf32> to vector<1x8x1xf32>
      %81 = tpu.reciprocal %80 : vector<1x8x1xf32> -> vector<1x8x1xf32>
      %82 = vector.broadcast %81 : vector<1x8x1xf32> to vector<1x8x8xf32>
      %83 = arith.mulf %78, %82 : vector<1x8x8xf32>
      %cst_48 = arith.constant dense<0.000000e+00> : vector<1x8x128xf32>
      %84 = tpu.matmul %83, %72, %cst_48 {dimension_numbers = #tpu.dot_dimension_numbers<[2], [1], [1], [2], [0, 0, 0, 1, 1, 2], [0], [0]>} : vector<1x8x8xf32>, vector<1x8x128xf32>, vector<1x8x128xf32> -> vector<1x8x128xf32>
      %85 = vector.shape_cast %84 : vector<1x8x128xf32> to vector<8x128xf32>
      %c0_49 = arith.constant 0 : index
      %c0_50 = arith.constant 0 : index
      %86 = vector.load %arg13[%c0_49, %c0_50] : memref<128x128xf32, #tpu.memory_space<vmem>>, vector<128x128xf32>
      %cst_51 = arith.constant dense<0.000000e+00> : vector<8x128xf32>
      %87 = tpu.matmul %85, %86, %cst_51 {dimension_numbers = #tpu.dot_dimension_numbers<[1], [0], [0], [1], [0, 0, 1, 1], [], []>} : vector<8x128xf32>, vector<128x128xf32>, vector<8x128xf32> -> vector<8x128xf32>
      %c0_52 = arith.constant 0 : index
      %c0_53 = arith.constant 0 : index
      %88 = vector.load %arg14[%c0_52, %c0_53] : memref<1x128xf32, #tpu.memory_space<vmem>>, vector<1x128xf32>
      %89 = vector.broadcast %88 : vector<1x128xf32> to vector<8x128xf32>
      %90 = arith.addf %87, %89 : vector<8x128xf32>
      %91 = arith.addf %28, %90 : vector<8x128xf32>
      %c0_54 = arith.constant 0 : index
      %c0_55 = arith.constant 0 : index
      %92 = vector.load %arg20[%c0_54, %c0_55] : memref<8x128xf32, #tpu.memory_space<vmem>>, vector<8x128xf32>
      tpu.vector_store %arg20[%c0_54, %c0_55], %91 {strides = array<i32>} : memref<8x128xf32, #tpu.memory_space<vmem>>, vector<8x128xf32>,
      %c0_56 = arith.constant 0 : index
      %c0_57 = arith.constant 0 : index
      %93 = vector.load %arg5[%c0_56, %c0_57] : memref<1x128xf32, #tpu.memory_space<vmem>>, vector<1x128xf32>
      %c0_58 = arith.constant 0 : index
      %c0_59 = arith.constant 0 : index
      %94 = vector.load %arg6[%c0_58, %c0_59] : memref<1x128xf32, #tpu.memory_space<vmem>>, vector<1x128xf32>
      %cst_60 = arith.constant dense<0.000000e+00> : vector<8xf32>
      %95 = vector.multi_reduction <add>, %91, %cst_60 [1] : vector<8x128xf32> to vector<8xf32>
      %96 = vector.shape_cast %95 : vector<8xf32> to vector<8x1xf32>
      %cst_61 = arith.constant 3.125000e-02 : f32
      %97 = vector.broadcast %cst_61 : f32 to vector<8x1xf32>
      %98 = arith.mulf %96, %97 : vector<8x1xf32>
      %99 = vector.broadcast %98 : vector<8x1xf32> to vector<8x128xf32>
      %100 = arith.subf %91, %99 : vector<8x128xf32>
      %cst_62 = arith.constant 0.000000e+00 : f32
      %101 = vector.shape_cast %2 : vector<1x128xi1> to vector<1x128xi1>
      %102 = vector.broadcast %101 : vector<1x128xi1> to vector<8x128xi1>
      %103 = vector.broadcast %cst_62 : f32 to vector<8x128xf32>
      %104 = arith.select %102, %100, %103 : vector<8x128xi1>, vector<8x128xf32>
      %105 = arith.mulf %104, %104 : vector<8x128xf32>
      %cst_63 = arith.constant dense<0.000000e+00> : vector<8xf32>
      %106 = vector.multi_reduction <add>, %105, %cst_63 [1] : vector<8x128xf32> to vector<8xf32>
      %107 = vector.shape_cast %106 : vector<8xf32> to vector<8x1xf32>
      %cst_64 = arith.constant 3.125000e-02 : f32
      %108 = vector.broadcast %cst_64 : f32 to vector<8x1xf32>
      %109 = arith.mulf %107, %108 : vector<8x1xf32>
      %cst_65 = arith.constant 9.99999974E-6 : f32
      %110 = vector.broadcast %cst_65 : f32 to vector<8x1xf32>
      %111 = arith.addf %109, %110 : vector<8x1xf32>
      %112 = math.rsqrt %111 : vector<8x1xf32>
      %113 = vector.broadcast %112 : vector<8x1xf32> to vector<8x128xf32>
      %114 = arith.mulf %104, %113 : vector<8x128xf32>
      %115 = vector.broadcast %93 : vector<1x128xf32> to vector<8x128xf32>
      %116 = arith.mulf %114, %115 : vector<8x128xf32>
      %117 = vector.broadcast %94 : vector<1x128xf32> to vector<8x128xf32>
      %118 = arith.addf %116, %117 : vector<8x128xf32>
      %c0_66 = arith.constant 0 : index
      %c0_67 = arith.constant 0 : index
      %119 = vector.load %arg21[%c0_66, %c0_67] : memref<8x128xf32, #tpu.memory_space<vmem>>, vector<8x128xf32>
      tpu.vector_store %arg21[%c0_66, %c0_67], %118 {strides = array<i32>} : memref<8x128xf32, #tpu.memory_space<vmem>>, vector<8x128xf32>,
      %cst_68 = arith.constant 0.000000e+00 : f32
      %120 = vector.broadcast %cst_68 : f32 to vector<8x128xf32>
      %c0_69 = arith.constant 0 : index
      %c0_70 = arith.constant 0 : index
      %121 = vector.load %arg22[%c0_69, %c0_70] : memref<8x128xf32, #tpu.memory_space<vmem>>, vector<8x128xf32>
      tpu.vector_store %arg22[%c0_69, %c0_70], %120 {strides = array<i32>} : memref<8x128xf32, #tpu.memory_space<vmem>>, vector<8x128xf32>,
    } else {
    }
    %c0 = arith.constant 0 : index
    %c0_1 = arith.constant 0 : index
    %6 = vector.load %arg21[%c0, %c0_1] : memref<8x128xf32, #tpu.memory_space<vmem>>, vector<8x128xf32>
    %c0_2 = arith.constant 0 : index
    %c0_3 = arith.constant 0 : index
    %7 = vector.load %arg15[%c0_2, %c0_3] : memref<128x128xf32, #tpu.memory_space<vmem>>, vector<128x128xf32>
    %cst = arith.constant dense<0.000000e+00> : vector<8x128xf32>
    %8 = tpu.matmul %6, %7, %cst {dimension_numbers = #tpu.dot_dimension_numbers<[1], [0], [0], [1], [0, 0, 1, 1], [], []>} : vector<8x128xf32>, vector<128x128xf32>, vector<8x128xf32> -> vector<8x128xf32>
    %c0_4 = arith.constant 0 : index
    %c0_5 = arith.constant 0 : index
    %9 = vector.load %arg16[%c0_4, %c0_5] : memref<1x128xf32, #tpu.memory_space<vmem>>, vector<1x128xf32>
    %10 = vector.broadcast %9 : vector<1x128xf32> to vector<8x128xf32>
    %11 = arith.addf %8, %10 : vector<8x128xf32>
    %cst_6 = arith.constant 5.000000e-01 : f32
    %12 = vector.broadcast %cst_6 : f32 to vector<8x128xf32>
    %13 = arith.mulf %12, %11 : vector<8x128xf32>
    %cst_7 = arith.constant 0.707106769 : f32
    %14 = vector.broadcast %cst_7 : f32 to vector<8x128xf32>
    %15 = arith.mulf %11, %14 : vector<8x128xf32>
    %16 = math.erf %15 : vector<8x128xf32>
    %cst_8 = arith.constant 1.000000e+00 : f32
    %17 = vector.broadcast %cst_8 : f32 to vector<8x128xf32>
    %18 = arith.addf %17, %16 : vector<8x128xf32>
    %19 = arith.mulf %13, %18 : vector<8x128xf32>
    %c0_9 = arith.constant 0 : index
    %c0_10 = arith.constant 0 : index
    %20 = vector.load %arg22[%c0_9, %c0_10] : memref<8x128xf32, #tpu.memory_space<vmem>>, vector<8x128xf32>
    %c0_11 = arith.constant 0 : index
    %c0_12 = arith.constant 0 : index
    %21 = vector.load %arg17[%c0_11, %c0_12] : memref<128x128xf32, #tpu.memory_space<vmem>>, vector<128x128xf32>
    %cst_13 = arith.constant dense<0.000000e+00> : vector<8x128xf32>
    %22 = tpu.matmul %19, %21, %cst_13 {dimension_numbers = #tpu.dot_dimension_numbers<[1], [0], [0], [1], [0, 0, 1, 1], [], []>} : vector<8x128xf32>, vector<128x128xf32>, vector<8x128xf32> -> vector<8x128xf32>
    %23 = arith.addf %20, %22 : vector<8x128xf32>
    %c0_14 = arith.constant 0 : index
    %c0_15 = arith.constant 0 : index
    %24 = vector.load %arg22[%c0_14, %c0_15] : memref<8x128xf32, #tpu.memory_space<vmem>>, vector<8x128xf32>
    tpu.vector_store %arg22[%c0_14, %c0_15], %23 {strides = array<i32>} : memref<8x128xf32, #tpu.memory_space<vmem>>, vector<8x128xf32>,
    %c0_i32_16 = arith.constant 0 : i32
    %25 = arith.cmpi eq, %arg1, %c0_i32_16 : i32
    %26 = arith.extui %25 : i1 to i32
    %c0_i32_17 = arith.constant 0 : i32
    %27 = arith.cmpi ne, %26, %c0_i32_17 : i32
    scf.if %27 {
      %c0_18 = arith.constant 0 : index
      %c0_19 = arith.constant 0 : index
      %28 = vector.load %arg20[%c0_18, %c0_19] : memref<8x128xf32, #tpu.memory_space<vmem>>, vector<8x128xf32>
      %c0_20 = arith.constant 0 : index
      %c0_21 = arith.constant 0 : index
      %29 = vector.load %arg22[%c0_20, %c0_21] : memref<8x128xf32, #tpu.memory_space<vmem>>, vector<8x128xf32>
      %30 = arith.addf %28, %29 : vector<8x128xf32>
      %c0_22 = arith.constant 0 : index
      %c0_23 = arith.constant 0 : index
      %31 = vector.load %arg18[%c0_22, %c0_23] : memref<1x128xf32, #tpu.memory_space<vmem>>, vector<1x128xf32>
      %32 = vector.broadcast %31 : vector<1x128xf32> to vector<8x128xf32>
      %33 = arith.addf %30, %32 : vector<8x128xf32>
      %c0_24 = arith.constant 0 : index
      %c0_25 = arith.constant 0 : index
      %34 = vector.load %arg19[%c0_24, %c0_25] : memref<8x128xf32, #tpu.memory_space<vmem>>, vector<8x128xf32>
      tpu.vector_store %arg19[%c0_24, %c0_25], %33 {strides = array<i32>} : memref<8x128xf32, #tpu.memory_space<vmem>>, vector<8x128xf32>,
    } else {
    }
    return
  }
  func.func @transform_0(%arg0: i32, %arg1: i32) -> (i32, i32) {
    %c0_i32 = arith.constant 0 : i32
    %c0_i32_0 = arith.constant 0 : i32
    return %arg0, %c0_i32 : i32, i32
  }
  func.func @transform_1(%arg0: i32, %arg1: i32) -> (i32, i32) {
    %c0_i32 = arith.constant 0 : i32
    %c0_i32_0 = arith.constant 0 : i32
    %c0_i32_1 = arith.constant 0 : i32
    return %c0_i32, %c0_i32_0 : i32, i32
  }
  func.func @transform_2(%arg0: i32, %arg1: i32) -> (i32, i32) {
    %c0_i32 = arith.constant 0 : i32
    %c0_i32_0 = arith.constant 0 : i32
    %c0_i32_1 = arith.constant 0 : i32
    return %c0_i32, %c0_i32_0 : i32, i32
  }
  func.func @transform_3(%arg0: i32, %arg1: i32) -> (i32, i32) {
    %c0_i32 = arith.constant 0 : i32
    %c0_i32_0 = arith.constant 0 : i32
    %c0_i32_1 = arith.constant 0 : i32
    return %c0_i32, %c0_i32_0 : i32, i32
  }
  func.func @transform_4(%arg0: i32, %arg1: i32) -> (i32, i32) {
    %c0_i32 = arith.constant 0 : i32
    %c0_i32_0 = arith.constant 0 : i32
    %c0_i32_1 = arith.constant 0 : i32
    return %c0_i32, %c0_i32_0 : i32, i32
  }
  func.func @transform_5(%arg0: i32, %arg1: i32) -> (i32, i32) {
    %c0_i32 = arith.constant 0 : i32
    %c0_i32_0 = arith.constant 0 : i32
    %c0_i32_1 = arith.constant 0 : i32
    return %c0_i32, %c0_i32_0 : i32, i32
  }
  func.func @transform_6(%arg0: i32, %arg1: i32) -> (i32, i32) {
    %c0_i32 = arith.constant 0 : i32
    %c0_i32_0 = arith.constant 0 : i32
    %c0_i32_1 = arith.constant 0 : i32
    return %c0_i32, %c0_i32_0 : i32, i32
  }
  func.func @transform_7(%arg0: i32, %arg1: i32) -> (i32, i32) {
    %c0_i32 = arith.constant 0 : i32
    %c0_i32_0 = arith.constant 0 : i32
    %c0_i32_1 = arith.constant 0 : i32
    return %c0_i32, %c0_i32_0 : i32, i32
  }
  func.func @transform_8(%arg0: i32, %arg1: i32) -> (i32, i32) {
    %c0_i32 = arith.constant 0 : i32
    %c0_i32_0 = arith.constant 0 : i32
    %c0_i32_1 = arith.constant 0 : i32
    return %c0_i32, %c0_i32_0 : i32, i32
  }
  func.func @transform_9(%arg0: i32, %arg1: i32) -> (i32, i32) {
    %c0_i32 = arith.constant 0 : i32
    %c0_i32_0 = arith.constant 0 : i32
    %c0_i32_1 = arith.constant 0 : i32
    return %c0_i32, %c0_i32_0 : i32, i32
  }
  func.func @transform_10(%arg0: i32, %arg1: i32) -> (i32, i32) {
    %c0_i32 = arith.constant 0 : i32
    %c0_i32_0 = arith.constant 0 : i32
    %c0_i32_1 = arith.constant 0 : i32
    return %c0_i32, %c0_i32_0 : i32, i32
  }
  func.func @transform_11(%arg0: i32, %arg1: i32) -> (i32, i32) {
    %c0_i32 = arith.constant 0 : i32
    %c0_i32_0 = arith.constant 0 : i32
    %c0_i32_1 = arith.constant 0 : i32
    return %c0_i32, %c0_i32_0 : i32, i32
  }
  func.func @transform_12(%arg0: i32, %arg1: i32) -> (i32, i32) {
    %c0_i32 = arith.constant 0 : i32
    %c0_i32_0 = arith.constant 0 : i32
    %c0_i32_1 = arith.constant 0 : i32
    return %c0_i32, %c0_i32_0 : i32, i32
  }
  func.func @transform_13(%arg0: i32, %arg1: i32) -> (i32, i32) {
    %c0_i32 = arith.constant 0 : i32
    %c0_i32_0 = arith.constant 0 : i32
    return %c0_i32, %arg1 : i32, i32
  }
  func.func @transform_14(%arg0: i32, %arg1: i32) -> (i32, i32) {
    %c0_i32 = arith.constant 0 : i32
    %c0_i32_0 = arith.constant 0 : i32
    return %c0_i32, %arg1 : i32, i32
  }
  func.func @transform_15(%arg0: i32, %arg1: i32) -> (i32, i32) {
    %c0_i32 = arith.constant 0 : i32
    %c0_i32_0 = arith.constant 0 : i32
    return %arg1, %c0_i32 : i32, i32
  }
  func.func @transform_16(%arg0: i32, %arg1: i32) -> (i32, i32) {
    %c0_i32 = arith.constant 0 : i32
    %c0_i32_0 = arith.constant 0 : i32
    %c0_i32_1 = arith.constant 0 : i32
    return %c0_i32, %c0_i32_0 : i32, i32
  }
  func.func @transform_17(%arg0: i32, %arg1: i32) -> (i32, i32) {
    %c0_i32 = arith.constant 0 : i32
    %c0_i32_0 = arith.constant 0 : i32
    return %arg0, %c0_i32 : i32, i32
  }
}

</mosaic_0001>

<bundles_post_ra>
// kernel: tpu_custom_call.1
= control target key start
LH: loop header
LB: loop body
LE: loop exit
PB: predicated region body
PF: predicated region fallthrough
CT: control target
= control target key end

     0   :  { %s3178_s0 = inlined_call_operand.hbm [shape: f32[16,128], index: 0, kind: input, shape index: {}]   ;;  %s3179_s1 = inlined_call_operand.vmem [shape: f32[1,128], index: 1, kind: input, shape index: {}]   ;;  %s3180_s2 = inlined_call_operand.vmem [shape: f32[1,128], index: 2, kind: input, shape index: {}]   ;;  %s3181_s3 = inlined_call_operand.vmem [shape: f32[1,128], index: 3, kind: input, shape index: {}]   ;;  %s3182_s4 = inlined_call_operand.vmem [shape: f32[1,128], index: 4, kind: input, shape index: {}]   ;;  %s3183_s5 = inlined_call_operand.hbm [shape: f32[128,128], index: 5, kind: input, shape index: {}]   ;;  %s3184_s6 = inlined_call_operand.vmem [shape: f32[1,128], index: 6, kind: input, shape index: {}]   ;;  %s3185_s7 = inlined_call_operand.hbm [shape: f32[128,128], index: 7, kind: input, shape index: {}]   ;;  %s3186_s8 = inlined_call_operand.vmem [shape: f32[1,128], index: 8, kind: input, shape index: {}]   ;;  %s3187_s9 = inlined_call_operand.hbm [shape: f32[128,128], index: 9, kind: input, shape index: {}]   ;;  %s3188_s10 = inlined_call_operand.vmem [shape: f32[1,128], index: 10, kind: input, shape index: {}]   ;;  %s3189_s11 = inlined_call_operand.hbm [shape: f32[128,128], index: 11, kind: input, shape index: {}]   ;;  %s3190_s12 = inlined_call_operand.vmem [shape: f32[1,128], index: 12, kind: input, shape index: {}]   ;;  %s3191_s13 = inlined_call_operand.hbm [shape: f32[128,128], index: 13, kind: input, shape index: {}]   ;;  %s3192_s14 = inlined_call_operand.vmem [shape: f32[1,128], index: 14, kind: input, shape index: {}]   ;;  %s3193_s15 = inlined_call_operand.hbm [shape: f32[128,128], index: 15, kind: input, shape index: {}]   ;;  %s3194_s16 = inlined_call_operand.vmem [shape: f32[1,128], index: 16, kind: input, shape index: {}]   ;;  %s3195_s17 = inlined_call_operand.hbm [shape: f32[16,128], index: 17, kind: output, shape index: {}]  }
   0x1   :  { %3203 = sst [smem:[#allocation24_spill]] %s3178_s0 }
   0x2   :  { %3204 = sst [smem:[#allocation25_spill]] %s3179_s1 }
   0x3   :  { %3205 = sst [smem:[#allocation26_spill]] %s3181_s3 }
   0x4   :  { %3206 = sst [smem:[#allocation27_spill]] %s3182_s4 }
   0x5   :  { %3207 = sst [smem:[#allocation28_spill]] %s3183_s5 }
   0x6   :  { %3208 = sst [smem:[#allocation29_spill]] %s3184_s6 }
   0x7   :  { %3209 = sst [smem:[#allocation30_spill]] %s3185_s7 }
   0x8   :  { %3210 = sst [smem:[#allocation31_spill]] %s3188_s10 }
   0x9   :  { %3211 = sst [smem:[#allocation32_spill]] %s3190_s12 }
   0xa   :  { %3212 = sst [smem:[#allocation33_spill]] %s3192_s14 }
   0xb   :  { %3213 = sst [smem:[#allocation34_spill]] %s3194_s16 }
   0xc   :  { %3214 = sst [smem:[#allocation35_spill]] %s3195_s17 }
   0xd   :  { %22 = vsyncpa [#allocation6], 0 }
   0xe   :  { %24 = vsyncpa [#allocation6 + $0x1], 0 }
   0xf   :  { %25 = vsyncpa [#allocation9], 0 }
  0x10   :  { %26 = vsyncpa [#allocation12], 0 }
  0x11   :  { %27 = vsyncpa [#allocation15], 0 }
  0x12   :  { %28 = vsyncpa [#allocation7], 0 }
  0x13   :  { %30 = vsyncpa [#allocation7 + $0x1], 0  ;;  %s2700_s24 = smov 0   ;;  %s2702_s25 = smov 0  }
  0x14   :  { %s2704_s26 = smov 0   ;;  %s2706_s27 = smov 0  }
  0x15   :  { %s2708_s28 = smov 0   ;;  %s2710_s29 = smov 0  }
  0x16 LB: > { %3215 = sst [smem:[#allocation23_spill]] %s2587_s27  ;;  %s3197_s0 = sadd.s32 4294967295, %s2595_s29   ;;  %s2595_s29 = sphi %s2710_s29, %s36_s29   ;;  %s2591_s28 = sphi %s2708_s28, %s3249_s28   ;;  %s2587_s27 = sphi %s2706_s27, %s3248_s27   ;;  %s2583_s26 = sphi %s2704_s26, %s3247_s26   ;;  %s2579_s25 = sphi %s2702_s25, %s3246_s25   ;;  %s2575_s24 = sphi %s2700_s24, %s3245_s24  }
  0x17   : > { %p1660_p0 = scmp.ge.s32.totalorder %s2595_s29, 1  ;;  %p2734_p1 = scmp.eq.s32.totalorder %s3197_s0, 0 }
  0x18   : > { %p456_p2 = scmp.lt.s32.totalorder %s2595_s29, 3  ;;  %s2597_s19 = smov [#allocation8]  }
  0x19   : > { %s3216_s30 = scalar_select %p2734_p1, 1, 0 }
  0x1a   : > { %p2739_p3 = pnand %p1660_p0, %p456_p2  ;;  %s480_s1 = sshll.u32 %s2597_s19, 4  ;;  %s2743_s1 = int_to_ptr.vmem [resolvable:$true] %s480_s1 }
  0x1b   : > { %s2598_s21 = smov [#allocation11]   ;;  %s2599_s23 = smov [#allocation14]  }
  0x1c   : > { %s3217_s18 = scalar_select %p2739_p3, 1, 0 }
  0x1d   : > { %p2193_p4 = pneg %p2739_p3  ;;  %s512_s22 = sshll.u32 %s2598_s21, 4  ;;  %s2754_s22 = int_to_ptr.vmem [resolvable:$true] %s512_s22 }
  0x1e   : > { %s2756_s0 = sshll.u32 %s2599_s23, 4  ;;  %s3219_s5 = sld [smem:[#allocation28_spill]]  ;;  %s547_s0 = int_to_ptr.vmem [resolvable:$true] %s2756_s0 }
  0x1f   : > { %p2750_p6 = pnand %p2193_p4, %p2734_p1 }
  0x21   : > { %p2766_p8 = pneg %p2750_p6 }
  0x24   : > { %s2303_s16 = scalar_lea.hbm %s3219_s5, 2048 }
  0x25   : > { %p2304_p7 = scmp.ne.s32.totalorder %s3219_s5, %s2303_s16  ;;  %p2310_p11 = scmp.lt.u32.totalorder %s2303_s16, %s3219_s5 }
  0x27   : > { %p2306_p9 = pnand %p2766_p8, %p2304_p7 }
  0x29   : > { %p2307_p10 = pneg %p2306_p9 }
  0x2b   : > { %p2312_p12 = pnand %p2310_p11, %p2307_p10 }
  0x2d   : > { %2315 = shalt.err (!%p2312_p12)
}
  0x2e   : > { %s2316_s14 = scalar_lea.vmem %s2743_s1, 2048  ;;  %p2324_p4 = scmp.lt.s32.totalorder %s2743_s1, %s2743_s1 }
  0x2f   : > { %p2317_p13 = scmp.ne.s32.totalorder %s2743_s1, %s2316_s14  ;;  %p2325_p5 = scmp.lt.s32.totalorder %s2316_s14, %s2316_s14 }
  0x31   : > { %p2319_p0 = pnand %p2317_p13, %p2766_p8  ;;  %p2326_p7 = por %p2325_p5, %p2324_p4 }
  0x33   : > { %p2320_p2 = pneg %p2319_p0 }
  0x35   : > { %p2327_p9 = pnand %p2326_p7, %p2320_p2 }
  0x37   : > { %2330 = shalt.err (!%p2327_p9)
}
  0x38   : > { %s2600_s17 = smov 128   ;;  %s2601_s16 = smov 8  }
  0x39   : > { %2196 = dma.hbm_to_vmem [thread:$0]  (!%p2750_p6), %s3219_s5, 2048, %s2743_s1, [#allocation9], %s2600_s17, %s2600_s17, %s2601_s16  }
  0x3a   : > { %s2331_s14 = scalar_lea.hbm %s3187_s9, 2048 }
  0x3b   : > { %p2332_p5 = scmp.ne.s32.totalorder %s3187_s9, %s2331_s14  ;;  %p2338_p12 = scmp.lt.u32.totalorder %s2331_s14, %s3187_s9 }
  0x3d   : > { %p2334_p10 = pnand %p2332_p5, %p2766_p8 }
  0x3f   : > { %p2335_p11 = pneg %p2334_p10 }
  0x41   : > { %p2340_p13 = pnand %p2338_p12, %p2335_p11 }
  0x43   : > { %2343 = shalt.err (!%p2340_p13)
}
  0x44   : > { %s2344_s1 = scalar_lea.vmem %s2754_s22, 2048  ;;  %p2352_p7 = scmp.lt.s32.totalorder %s2754_s22, %s2754_s22 }
  0x45   : > { %p2345_p0 = scmp.ne.s32.totalorder %s2754_s22, %s2344_s1  ;;  %p2353_p9 = scmp.lt.s32.totalorder %s2344_s1, %s2344_s1 }
  0x47   : > { %p2347_p2 = pnand %p2345_p0, %p2766_p8  ;;  %p2354_p5 = por %p2353_p9, %p2352_p7 }
  0x49   : > { %p2348_p4 = pneg %p2347_p2 }
  0x4b   : > { %p2355_p10 = pnand %p2354_p5, %p2348_p4 }
  0x4d   : > { %2358 = shalt.err (!%p2355_p10)
}
  0x4e   : > { %2202 = dma.hbm_to_vmem [thread:$0]  (!%p2750_p6), %s3187_s9, 2048, %s2754_s22, [#allocation12], %s2600_s17, %s2600_s17, %s2601_s16  }
  0x4f   : > { %s2359_s27 = scalar_lea.hbm %s3191_s13, 2048 }
  0x50   : > { %p2360_p11 = scmp.ne.s32.totalorder %s3191_s13, %s2359_s27  ;;  %p2366_p0 = scmp.lt.u32.totalorder %s2359_s27, %s3191_s13 }
  0x52   : > { %p2362_p12 = pnand %p2360_p11, %p2766_p8 }
  0x54   : > { %p2363_p13 = pneg %p2362_p12 }
  0x56   : > { %p2368_p2 = pnand %p2366_p0, %p2363_p13 }
  0x58   : > { %2371 = shalt.err (!%p2368_p2)
}
  0x59   : > { %s2372_s1 = scalar_lea.vmem %s547_s0, 2048  ;;  %p2380_p5 = scmp.lt.s32.totalorder %s547_s0, %s547_s0 }
  0x5a   : > { %p2373_p4 = scmp.ne.s32.totalorder %s547_s0, %s2372_s1  ;;  %p2381_p10 = scmp.lt.s32.totalorder %s2372_s1, %s2372_s1 }
  0x5c   : > { %p2375_p7 = pnand %p2373_p4, %p2766_p8  ;;  %p2382_p3 = por %p2381_p10, %p2380_p5 }
  0x5e   : > { %p2376_p9 = pneg %p2375_p7 }
  0x60   : > { %p2383_p1 = pnand %p2382_p3, %p2376_p9 }
  0x62   : > { %2386 = shalt.err (!%p2383_p1)
}
  0x63   : > { %2208 = dma.hbm_to_vmem [thread:$0]  (!%p2750_p6), %s3191_s13, 2048, %s547_s0, [#allocation15], %s2600_s17, %s2600_s17, %s2601_s16  }
  0x64   : > { %s2602_s6 = smov [#allocation10]   ;;  %s2603_s12 = smov [#allocation13]  }
  0x65   : > { %s496_s10 = sshll.u32 %s2602_s6, 4  ;;  %s528_s27 = sshll.u32 %s2603_s12, 4  ;;  %s497_s10 = int_to_ptr.vmem [resolvable:$true] %s496_s10  ;;  %s529_s27 = int_to_ptr.vmem [resolvable:$true] %s528_s27 }
  0x66   : > { %s3221_s7 = sld [smem:[#allocation30_spill]] }
  0x6c   : > { %s2387_s23 = scalar_lea.hbm %s3221_s7, 2048 }
  0x6d   : > { %p2388_p1 = scmp.ne.s32.totalorder %s3221_s7, %s2387_s23  ;;  %p2394_p12 = scmp.lt.u32.totalorder %s2387_s23, %s3221_s7 }
  0x6f   : > { %p2390_p3 = pnand %p2388_p1, %p2766_p8 }
  0x71   : > { %p2391_p11 = pneg %p2390_p3 }
  0x73   : > { %p2396_p13 = pnand %p2394_p12, %p2391_p11 }
  0x75   : > { %2399 = shalt.err (!%p2396_p13)
}
  0x76   : > { %s2400_s0 = scalar_lea.vmem %s497_s10, 2048  ;;  %p2408_p7 = scmp.lt.s32.totalorder %s497_s10, %s497_s10 }
  0x77   : > { %p2401_p0 = scmp.ne.s32.totalorder %s497_s10, %s2400_s0  ;;  %p2409_p9 = scmp.lt.s32.totalorder %s2400_s0, %s2400_s0 }
  0x79   : > { %p2403_p2 = pnand %p2401_p0, %p2766_p8  ;;  %p2410_p5 = por %p2409_p9, %p2408_p7 }
  0x7b   : > { %p2404_p4 = pneg %p2403_p2 }
  0x7d   : > { %p2411_p10 = pnand %p2410_p5, %p2404_p4 }
  0x7f   : > { %2414 = shalt.err (!%p2411_p10)
}
  0x80   : > { %2199 = dma.hbm_to_vmem [thread:$0]  (!%p2750_p6), %s3221_s7, 2048, %s497_s10, [#allocation9], %s2600_s17, %s2600_s17, %s2601_s16  }
  0x81   : > { %s2415_s19 = scalar_lea.hbm %s3189_s11, 2048 }
  0x82   : > { %p2416_p1 = scmp.ne.s32.totalorder %s3189_s11, %s2415_s19  ;;  %p2422_p12 = scmp.lt.u32.totalorder %s2415_s19, %s3189_s11 }
  0x84   : > { %p2418_p3 = pnand %p2416_p1, %p2766_p8 }
  0x86   : > { %p2419_p11 = pneg %p2418_p3 }
  0x88   : > { %p2424_p13 = pnand %p2422_p12, %p2419_p11 }
  0x8a   : > { %2427 = shalt.err (!%p2424_p13)
}
  0x8b   : > { %s2428_s22 = scalar_lea.vmem %s529_s27, 2048  ;;  %p2436_p7 = scmp.lt.s32.totalorder %s529_s27, %s529_s27 }
  0x8c   : > { %p2429_p0 = scmp.ne.s32.totalorder %s529_s27, %s2428_s22  ;;  %p2437_p9 = scmp.lt.s32.totalorder %s2428_s22, %s2428_s22 }
  0x8e   : > { %p2431_p2 = pnand %p2429_p0, %p2766_p8  ;;  %p2438_p5 = por %p2437_p9, %p2436_p7 }
  0x90   : > { %p2432_p4 = pneg %p2431_p2 }
  0x92   : > { %p2439_p10 = pnand %p2438_p5, %p2432_p4 }
  0x94   : > { %2442 = shalt.err (!%p2439_p10)
}
  0x95   : > { %2205 = dma.hbm_to_vmem [thread:$0]  (!%p2750_p6), %s3189_s11, 2048, %s529_s27, [#allocation12], %s2600_s17, %s2600_s17, %s2601_s16  }
  0x96   : > { %s2604_s5 = smov [#allocation16]   ;;  %s2443_s19 = scalar_lea.hbm %s3193_s15, 2048 }
  0x97   : > { %s568_s3 = sshll.u32 %s2604_s5, 4  ;;  %p2444_p1 = scmp.ne.s32.totalorder %s3193_s15, %s2443_s19  ;;  %s569_s3 = int_to_ptr.vmem [resolvable:$true] %s568_s3 }
  0x98   : > { %p2450_p12 = scmp.lt.u32.totalorder %s2443_s19, %s3193_s15 }
  0x99   : > { %p2446_p3 = pnand %p2444_p1, %p2766_p8 }
  0x9b   : > { %p2447_p11 = pneg %p2446_p3 }
  0x9d   : > { %p2452_p13 = pnand %p2450_p12, %p2447_p11 }
  0x9f   : > { %2455 = shalt.err (!%p2452_p13)
}
  0xa0   : > { %s2456_s27 = scalar_lea.vmem %s569_s3, 2048  ;;  %p2464_p7 = scmp.lt.s32.totalorder %s569_s3, %s569_s3 }
  0xa1   : > { %p2457_p0 = scmp.ne.s32.totalorder %s569_s3, %s2456_s27  ;;  %p2465_p9 = scmp.lt.s32.totalorder %s2456_s27, %s2456_s27 }
  0xa3   : > { %p2459_p2 = pnand %p2457_p0, %p2766_p8  ;;  %p2466_p5 = por %p2465_p9, %p2464_p7 }
  0xa5   : > { %p2460_p4 = pneg %p2459_p2 }
  0xa7   : > { %p2467_p10 = pnand %p2466_p5, %p2460_p4 }
  0xa9   : > { %2470 = shalt.err (!%p2467_p10)
}
  0xaa   : > { %2211 = dma.hbm_to_vmem [thread:$0]  (!%p2750_p6), %s3193_s15, 2048, %s569_s3, [#allocation15], %s2600_s17, %s2600_s17, %s2601_s16  }
  0xab   : > { %s1659_s4 = sadd.s32 4294967294, %s2595_s29   ;;  %s48_s20 = sadd.s32 1, %s2591_s28 }
  0xac   : > { %p50_p8 = scmp.ge.s32.totalorder %s48_s20, 2  ;;  %s55_s0 = sadd.s32 1, %s2583_s26 }
  0xad   : > { %p62_p1 = scmp.ne.s32.totalorder %s2583_s26, %s2579_s25  ;;  %p63_p3 = scmp.eq.s32.totalorder %s2595_s29, 0 }
  0xae   : > { %s3251_s20 = smov (%p50_p8, %s48_s20), 0  ;;  %p68_p12 = scmp.ne.s32.totalorder %s2579_s25, %s2575_s24 }
  0xaf   : > { %p2909_p11 = por %p63_p3, %p62_p1  ;;  %s52_s17 = ssub.s32 %s2591_s28, %s3251_s20 }
  0xb0   : > { %s3223_s16 = sadd.s32 4294967295, %s2595_s29   ;;  %p53_p13 = scmp.eq.s32.totalorder %s52_s17, 0 }
  0xb1   : > { %p443_p6 = scmp.eq.s32.totalorder %s3223_s16, 1  ;;  %p3224_p0 = scmp.ne.s32.totalorder %s3216_s30, 0 }
  0xb2   : > { %p449_p7 = scmp.eq.s32.totalorder %s1659_s4, 1  ;;  %p2226_p5 = scmp.lt.s32.totalorder %s2595_s29, 2 }
  0xb3   : > { %p2921_p2 = por %p3224_p0, %p68_p12  ;;  %p2925_p4 = por %p443_p6, %p62_p1 }
  0xb4   : > { %s2930_s12 = scalar_select %p53_p13, %s2583_s26, %s55_s0  }
  0xb5   : > { %s3226_s6 = scalar_select %p2925_p4, 1, 0 }
  0xb6   : > { %p2932_p9 = por %p449_p7, %p68_p12  ;;  %s585_s21 = sand.u32 1, %s2583_s26  }
  0xb7   : > { %s1670_s23 = sshll.u32 %s2591_s28, 7  ;;  %s1669_s14 = sshll.u32 %s585_s21, 3 }
  0xb8   : > { %s3227_s19 = scalar_select %p2932_p9, 1, 0 }
  0xb9   : > { %s3228_s22 = sld [smem:[#allocation24_spill]]  ;;  %s589_s4 = scalar_lea.vmem [#allocation5], %s1669_s14 }
  0xba   : > { %s596_s0 = sshll.u32 %s589_s4, 4  ;;  %p2946_p10 = pnand %p2226_p5, %p2909_p11  ;;  %s2950_s0 = int_to_ptr.vmem [resolvable:$true] %s596_s0 }
  0xbb   : > { %s586_s16 = scalar_lea.sflag [#allocation6], %s585_s21 }
  0xbc   : > { %p2473_p1 = pneg %p2946_p10 }
  0xbf   : > { %s2942_s10 = scalar_lea.hbm %s3228_s22, %s1670_s23  ;;  %s2476_s5 = scalar_lea.hbm %s3228_s22, 256 }
  0xc0   : > { %s2471_s7 = scalar_lea.hbm %s2942_s10, 128  ;;  %p2477_p11 = scmp.lt.u32.totalorder %s2942_s10, %s3228_s22 }
  0xc1   : > { %p2472_p8 = scmp.ne.s32.totalorder %s2942_s10, %s2471_s7  ;;  %p2478_p6 = scmp.lt.u32.totalorder %s2476_s5, %s2471_s7 }
  0xc2   : > { %p2480_p0 = scmp.lt.u32.totalorder %s2471_s7, %s2942_s10 }
  0xc3   : > { %p2474_p3 = pnand %p2473_p1, %p2472_p8  ;;  %p2479_p13 = por %p2478_p6, %p2477_p11 }
  0xc5   : > { %p2475_p12 = pneg %p2474_p3  ;;  %p2481_p7 = por %p2480_p0, %p2479_p13 }
  0xc7   : > { %p2482_p5 = pnand %p2481_p7, %p2475_p12 }
  0xc9   : > { %2485 = shalt.err (!%p2482_p5)
}
  0xca   : > { %s2486_s21 = scalar_lea.vmem %s2950_s0, 128  ;;  %s2605_s4 = smov [#allocation5]  }
  0xcb   : > { %p2487_p8 = scmp.ne.s32.totalorder %s2950_s0, %s2486_s21  ;;  %s2491_s23 = sshll.u32 %s2605_s4, 4  ;;  %s2492_s23 = int_to_ptr.vmem [resolvable:$false] %s2491_s23 }
  0xcc   : > { %s2493_s14 = scalar_lea.vmem %s2492_s23, 256  ;;  %p2494_p4 = scmp.lt.s32.totalorder %s2950_s0, %s2492_s23 }
  0xcd   : > { %p2489_p3 = pnand %p2487_p8, %p2473_p1  ;;  %p2495_p11 = scmp.lt.s32.totalorder %s2493_s14, %s2486_s21 }
  0xcf   : > { %p2490_p9 = pneg %p2489_p3  ;;  %p2496_p6 = por %p2495_p11, %p2494_p4 }
  0xd1   : > { %p2497_p13 = pnand %p2496_p6, %p2490_p9 }
  0xd3   : > { %2500 = shalt.err (!%p2497_p13)
}
  0xd4   : > { %2215 = dma.hbm_to_vmem [thread:$0]  (!%p2946_p10), %s2942_s10, 128, %s2950_s0, %s586_s16  }
  0xd5   : > { %p3230_p12 = scmp.ne.s32.totalorder %s3217_s18, 0 }
  0xd6   : > { %s2980_s7 = sand.u32 (!%p3230_p12), 1, %s2579_s25  }
  0xd7   : > { %605 = sbr.rel (%p3230_p12) target bundleno = 2487 (0x9b7), region = 88  ;;  %s1672_s5 = sshll.u32 (!%p3230_p12), %s2980_s7, 3 }
  0xd8   : > { %s608_s1 = scalar_lea.sflag (!%p3230_p12), [#allocation6], %s2980_s7  ;;  %s611_s27 = scalar_lea.vmem (!%p3230_p12), [#allocation5], %s1672_s5 }
  0xde   : > { %2554 = dma.done.wait (%p2921_p2), %s608_s1, 128  }
  0xdf   : > { %2556 = vsyncadd (%p2921_p2), %s608_s1, 4294967168  ;;  %p3231_p4 = scmp.ne.s32.totalorder %s3216_s30, 0 }
  0xe1   : > { %2558 = dma.done.wait (%p3231_p4), [#allocation9], 4096  }
  0xe2   : > { %2560 = vsyncadd (%p3231_p4), [#allocation9], 4294963200 }
  0xe3   : > { %2562 = dma.done.wait (%p3231_p4), [#allocation12], 4096  }
  0xe4   : > { %2564 = vsyncadd (%p3231_p4), [#allocation12], 4294963200 }
  0xe5   : > { %2566 = dma.done.wait (%p3231_p4), [#allocation15], 4096  }
  0xe6   : > { %2568 = vsyncadd (%p3231_p4), [#allocation15], 4294963200  ;;  %v3002_v0 = vld [vmem:[%s611_s27] sm:$0xff]  ;;  %v731_v1 = vld [vmem:[#allocation8] sm:$0xff]  ;;  %v2606_v4 = vmov 0.0|0.0   ;;  %v693_v20 = vlaneseq  ;;  %vm2607_vm1 = vmmov 0  }
  0xe7   : > { %703 = vadd.xlane.f32.xlu0 %v3002_v0  ;;  %v732_v2 = vld [vmem:[#allocation8 + $0x8] sm:$0xff]  ;;  %v824_v3 = vld [vmem:[#allocation10] sm:$0xff]  ;;  %2021 = vmatprep.subr.bf16.mxu0 %v2606_v4  ;;  %v733_v7 = vld [vmem:[#allocation8 + $0x10] sm:$0xff]  ;;  %v2608_v44 = vmov 0.0   ;;  %s3232_s3 = sld [smem:[#allocation25_spill]]  ;;  %s3233_s23 = sld [smem:[#allocation29_spill]] }
  0xe8   : > { %v2022_v5 = vpack.c.bf16 %v732_v2, %v731_v1  ;;  %2045 = vmatprep.subr.bf16.mxu1 %v2606_v4  ;;  %v825_v6 = vld [vmem:[#allocation10 + $0x8] sm:$0xff]  ;;  %v734_v8 = vld [vmem:[#allocation8 + $0x18] sm:$0xff]  ;;  %v826_v10 = vld [vmem:[#allocation10 + $0x10] sm:$0xff]  ;;  %v3013_v21 = vand.u32 127, %v693_v20  ;;  %1833 = vmatprep.mubr.msk.f32.mxu0 %vm2607_vm1, %v2608_v44  ;;  %s3234_s27 = sld [smem:[#allocation31_spill]]  ;;  %vm1080_vm2 = vcmask 64512  }
  0xe9   : > { %v2046_v9 = vpack.c.bf16 %v825_v6, %v824_v3  ;;  %v827_v11 = vld [vmem:[#allocation10 + $0x18] sm:$0xff]  ;;  %v2025_v12 = vpack.c.bf16 %v734_v8, %v733_v7  ;;  %v735_v14 = vld [vmem:[#allocation8 + $0x20] sm:$0xff]  ;;  %v736_v15 = vld [vmem:[#allocation8 + $0x28] sm:$0xff]  ;;  %1868 = vmatprep.mubr.msk.f32.mxu1 %vm2607_vm1, %v2608_v44  ;;  %s3236_s17 = sld [smem:[#allocation26_spill]]  ;;  %s3237_s4 = sld [smem:[#allocation27_spill]] }
  0xea   : > { %2023 = vmatpush3.bf16.msra.mxu0 %v2022_v5  ;;  %v2049_v13 = vpack.c.bf16 %v827_v11, %v826_v10  ;;  %v828_v16 = vld [vmem:[#allocation10 + $0x20] sm:$0xff]  ;;  %v829_v17 = vld [vmem:[#allocation10 + $0x28] sm:$0xff]  ;;  %v2028_v18 = vpack.c.bf16 %v736_v15, %v735_v14  ;;  %vm695_vm0 = vcmp.lt.s32.totalorder %v3013_v21, 32  ;;  %v737_v27 = vld [vmem:[#allocation8 + $0x30] sm:$0xff]  ;;  %s688_s0 = scalar_lea.vmem [#allocation17], %s1672_s5  ;;  %s1494_s1 = scalar_lea.sflag [#allocation7], %s2980_s7 }
  0xeb   : > { %2047 = vmatpush3.bf16.msra.mxu1 %v2046_v9  ;;  %2024 = vmatprep.subr.bf16.mxu0 %v2606_v4  ;;  %v2052_v19 = vpack.c.bf16 %v829_v17, %v828_v16  ;;  %v738_v28 = vld [vmem:[#allocation8 + $0x38] sm:$0xff]  ;;  %v830_v30 = vld [vmem:[#allocation10 + $0x30] sm:$0xff]  ;;  %v739_v33 = vld [vmem:[#allocation8 + $0x40] sm:$0xff]  ;;  %p3242_p9 = scmp.ne.s32.totalorder %s3226_s6, 0  ;;  %s2609_s5 = smov [#allocation17]  }
  0xec   : > { %2048 = vmatprep.subr.bf16.mxu1 %v2606_v4  ;;  %v2031_v29 = vpack.c.bf16 %v738_v28, %v737_v27  ;;  %v831_v31 = vld [vmem:[#allocation10 + $0x38] sm:$0xff]  ;;  %v740_v34 = vld [vmem:[#allocation8 + $0x48] sm:$0xff]  ;;  %v832_v36 = vld [vmem:[#allocation10 + $0x40] sm:$0xff] }
  0xed   : > { %v2055_v32 = vpack.c.bf16 %v831_v31, %v830_v30  ;;  %v2034_v35 = vpack.c.bf16 %v740_v34, %v739_v33  ;;  %v833_v37 = vld [vmem:[#allocation10 + $0x48] sm:$0xff]  ;;  %v741_v39 = vld [vmem:[#allocation8 + $0x50] sm:$0xff]  ;;  %v742_v40 = vld [vmem:[#allocation8 + $0x58] sm:$0xff] }
  0xee   : > { %2026 = vmatpush3.bf16.msra.mxu0 %v2025_v12  ;;  %v2058_v38 = vpack.c.bf16 %v833_v37, %v832_v36  ;;  %v834_v41 = vld [vmem:[#allocation10 + $0x50] sm:$0xff]  ;;  %v2037_v42 = vpack.c.bf16 %v742_v40, %v741_v39  ;;  %v835_v43 = vld [vmem:[#allocation10 + $0x58] sm:$0xff]  ;;  %v743_v46 = vld [vmem:[#allocation8 + $0x60] sm:$0xff] }
  0xef   : > { %2050 = vmatpush3.bf16.msra.mxu1 %v2049_v13  ;;  %2027 = vmatprep.subr.bf16.mxu0 %v2606_v4  ;;  %v2061_v45 = vpack.c.bf16 %v835_v43, %v834_v41  ;;  %v744_v47 = vld [vmem:[#allocation8 + $0x68] sm:$0xff]  ;;  %v836_v48 = vld [vmem:[#allocation10 + $0x60] sm:$0xff]  ;;  %v745_v52 = vld [vmem:[#allocation8 + $0x70] sm:$0xff] }
  0xf0   : > { %2051 = vmatprep.subr.bf16.mxu1 %v2606_v4  ;;  %v837_v49 = vld [vmem:[#allocation10 + $0x68] sm:$0xff]  ;;  %v2040_v50 = vpack.c.bf16 %v744_v47, %v743_v46  ;;  %v746_v53 = vld [vmem:[#allocation8 + $0x78] sm:$0xff]  ;;  %v838_v54 = vld [vmem:[#allocation10 + $0x70] sm:$0xff] }
  0xf1   : > { %v2064_v51 = vpack.c.bf16 %v837_v49, %v836_v48  ;;  %v839_v55 = vld [vmem:[#allocation10 + $0x78] sm:$0xff]  ;;  %v2043_v56 = vpack.c.bf16 %v746_v53, %v745_v52  ;;  %v1680_v62 = vld [vmem:[%s3232_s3] ss:$0 sm:$0xff]  ;;  %v917_v1 = vld [vmem:[#allocation11] sm:$0xff]  ;;  %s3235_s3 = sld [smem:[#allocation32_spill]] }
  0xf2   : > { %2029 = vmatpush3.bf16.msra.mxu0 %v2028_v18  ;;  %v2067_v57 = vpack.c.bf16 %v839_v55, %v838_v54  ;;  %v918_v2 = vld [vmem:[#allocation11 + $0x8] sm:$0xff]  ;;  %v1681_v3 = vld [vmem:[%s3180_s2] ss:$0 sm:$0xff]  ;;  %v920_v9 = vld [vmem:[#allocation11 + $0x18] sm:$0xff] }
  0xf3   : > { %2053 = vmatpush3.bf16.msra.mxu1 %v2052_v19  ;;  %2030 = vmatprep.subr.bf16.mxu0 %v2606_v4  ;;  %v2070_v6 = vpack.c.bf16 %v918_v2, %v917_v1  ;;  %v919_v8 = vld [vmem:[#allocation11 + $0x10] sm:$0xff]  ;;  %v921_v11 = vld [vmem:[#allocation11 + $0x20] sm:$0xff]  ;;  %v922_v12 = vld [vmem:[#allocation11 + $0x28] sm:$0xff] }
  0xf4   : > { %2054 = vmatprep.subr.bf16.mxu1 %v2606_v4  ;;  %v2073_v10 = vpack.c.bf16 %v920_v9, %v919_v8  ;;  %v2076_v13 = vpack.c.bf16 %v922_v12, %v921_v11  ;;  %v923_v14 = vld [vmem:[#allocation11 + $0x30] sm:$0xff]  ;;  %v924_v15 = vld [vmem:[#allocation11 + $0x38] sm:$0xff]  ;;  %v925_v17 = vld [vmem:[#allocation11 + $0x40] sm:$0xff] }
  0xf5   : > { %v2079_v16 = vpack.c.bf16 %v924_v15, %v923_v14  ;;  %v926_v18 = vld [vmem:[#allocation11 + $0x48] sm:$0xff]  ;;  %v927_v20 = vld [vmem:[#allocation11 + $0x50] sm:$0xff]  ;;  %v932_v28 = vld [vmem:[#allocation11 + $0x78] sm:$0xff] }
  0xf6   : > { %2032 = vmatpush3.bf16.msra.mxu0 %v2031_v29  ;;  %v2082_v19 = vpack.c.bf16 %v926_v18, %v925_v17  ;;  %v931_v27 = vld [vmem:[#allocation11 + $0x70] sm:$0xff]  ;;  %v1165_v52 = vld [vmem:[#allocation13] sm:$0xff]  ;;  %v1166_v53 = vld [vmem:[#allocation13 + $0x8] sm:$0xff] }
  0xf7   : > { %2056 = vmatpush3.bf16.msra.mxu1 %v2055_v32  ;;  %2033 = vmatprep.subr.bf16.mxu0 %v2606_v4  ;;  %v2091_v29 = vpack.c.bf16 %v932_v28, %v931_v27  ;;  %v1683_v30 = vld [vmem:[%s3186_s8] ss:$0 sm:$0xff]  ;;  %v2094_v55 = vpack.c.bf16 %v1166_v53, %v1165_v52  ;;  %v1172_v1 = vld [vmem:[#allocation13 + $0x38] sm:$0xff]  ;;  %v1178_v11 = vld [vmem:[#allocation13 + $0x68] sm:$0xff] }
  0xf8   : > { %2057 = vmatprep.subr.bf16.mxu1 %v2606_v4  ;;  %v1682_v33 = vld [vmem:[%s3233_s23] ss:$0 sm:$0xff]  ;;  %v1176_v8 = vld [vmem:[#allocation13 + $0x58] sm:$0xff]  ;;  %v1304_v21 = vld [vmem:[#allocation14 + $0x68] sm:$0xff]  ;;  %s3238_s23 = sld [smem:[#allocation23_spill]] }
  0xf9   : > { %v1180_v14 = vld [vmem:[#allocation13 + $0x78] sm:$0xff]  ;;  %v1686_v18 = vld [vmem:[%s3235_s3] ss:$0 sm:$0xff]  ;;  %v1391_v52 = vld [vmem:[#allocation16 + $0x8] sm:$0xff]  ;;  %s3240_s3 = sld [smem:[#allocation34_spill]] }
  0xfa   : > { %2035 = vmatpush3.bf16.msra.mxu0 %v2034_v35  ;;  %v1294_v28 = vld [vmem:[#allocation14 + $0x18] sm:$0xff]  ;;  %v1392_v53 = vld [vmem:[#allocation16 + $0x10] sm:$0xff] }
  0xfb   : > { %2059 = vmatpush3.bf16.msra.mxu1 %v2058_v38  ;;  %2036 = vmatprep.subr.bf16.mxu0 %v2606_v4  ;;  %v1684_v38 = vld [vmem:[%s3234_s27] ss:$0 sm:$0xff]  ;;  %s3239_s27 = sld [smem:[#allocation33_spill]] }
  0xfc   : > { %2060 = vmatprep.subr.bf16.mxu1 %v2606_v4 }
  0xfe   : > { %2038 = vmatpush3.bf16.msra.mxu0 %v2037_v42  ;;  %s1692_s10 = sshll.u32 %s3238_s23, 7 }
  0xff   : > { %2062 = vmatpush3.bf16.msra.mxu1 %v2061_v45  ;;  %2039 = vmatprep.subr.bf16.mxu0 %v2606_v4 }
 0x100   : > { %2063 = vmatprep.subr.bf16.mxu1 %v2606_v4 }
 0x102   : > { %2041 = vmatpush3.bf16.msra.mxu0 %v2040_v50 }
 0x103   : > { %2065 = vmatpush3.bf16.msra.mxu1 %v2064_v51  ;;  %2042 = vmatprep.subr.bf16.mxu0 %v2606_v4 }
 0x104   : > { %2066 = vmatprep.subr.bf16.mxu1 %v2606_v4 }
 0x106   : > { %2044 = vmatpush3.bf16.msra.mxu0 %v2043_v56 }
 0x107   : > { %2068 = vmatpush3.bf16.msra.mxu1 %v2067_v57  ;;  %2069 = vmatprep.subr.bf16.mxu0 %v2606_v4  ;;  %v1167_v57 = vld [vmem:[#allocation13 + $0x10] sm:$0xff] }
 0x108   : > { %1911 = vmatprep.subr.mxu1 %v2608_v44 }
 0x174   : > { %v704_v22 = vpop.xlane.xlu0 %703 }
 0x175   : > { %v705_v23 = vmul.f32 0.03125, %v704_v22  ;;  %v928_v22 = vld [vmem:[#allocation11 + $0x58] sm:$0xff] }
 0x177   : > { %v706_v24 = vsub.f32 %v3002_v0, %v705_v23  ;;  %v2085_v23 = vpack.c.bf16 %v928_v22, %v927_v20 }
 0x179   : > { %v3019_v25 = vsel %vm695_vm0, %v706_v24, 0.0  ;;  %v929_v24 = vld [vmem:[#allocation11 + $0x60] sm:$0xff] }
 0x17a   : > { %v710_v26 = vmul.f32 %v3019_v25, %v3019_v25 }
 0x17c   : > { %711 = vadd.xlane.f32.xlu0 %v710_v26 }
 0x209   : > { %v712_v58 = vpop.xlane.xlu0 %711 }
 0x20a   : > { %v713_v59 = vmul.f32 0.03125, %v712_v58  ;;  %v1168_v58 = vld [vmem:[#allocation13 + $0x18] sm:$0xff] }
 0x20c   : > { %v714_v60 = vadd.f32 1e-05, %v713_v59  ;;  %v2097_v59 = vpack.c.bf16 %v1168_v58, %v1167_v57  ;;  %v1394_v57 = vld [vmem:[#allocation16 + $0x20] sm:$0xff]  ;;  %v1395_v58 = vld [vmem:[#allocation16 + $0x28] sm:$0xff] }
 0x20e   : > { %2293 = vrsqrt.f32 %v714_v60  ;;  %v1169_v60 = vld [vmem:[#allocation13 + $0x20] sm:$0xff] }
 0x218   : > { %v2294_v61 = vpop.eup %2293 }
 0x219   : > { %v716_v63 = vmul.f32 %v2294_v61, %v3019_v25  ;;  %v930_v25 = vld [vmem:[#allocation11 + $0x68] sm:$0xff] }
 0x21a   : > { %v2088_v26 = vpack.c.bf16 %v930_v25, %v929_v24  ;;  %v1170_v61 = vld [vmem:[#allocation13 + $0x28] sm:$0xff]  ;;  %v1291_v24 = vld [vmem:[#allocation14] sm:$0xff] }
 0x21b   : > { %v723_v5 = vmul.f32 %v1680_v62, %v716_v63  ;;  %v2100_v62 = vpack.c.bf16 %v1170_v61, %v1169_v60  ;;  %v1171_v63 = vld [vmem:[#allocation13 + $0x30] sm:$0xff]  ;;  %v1292_v25 = vld [vmem:[#allocation14 + $0x8] sm:$0xff] }
 0x21c   : > { %v2103_v2 = vpack.c.bf16 %v1172_v1, %v1171_v63  ;;  %v2118_v27 = vpack.c.bf16 %v1292_v25, %v1291_v24  ;;  %v1687_v1 = vld [vmem:[%s3236_s17] ss:$0 sm:$0xff]  ;;  %s1507_s17 = sshll.u32 %s688_s0, 4  ;;  %s3131_s17 = int_to_ptr.vmem [resolvable:$true] %s1507_s17 }
 0x21d   : > { %v730_v7 = vadd.f32 %v1681_v3, %v723_v5  ;;  %v1173_v3 = vld [vmem:[#allocation13 + $0x40] sm:$0xff]  ;;  %v1174_v5 = vld [vmem:[#allocation13 + $0x48] sm:$0xff]  ;;  %v1689_v24 = vld [vmem:[%s3239_s27] ss:$0 sm:$0xff]  ;;  %s2501_s23 = scalar_lea.vmem %s3131_s17, 128  ;;  %s2505_s27 = sshll.u32 %s2609_s5, 4  ;;  %s2506_s27 = int_to_ptr.vmem [resolvable:$false] %s2505_s27 }
 0x21e   : > { %p2502_p2 = scmp.ne.s32.totalorder %s3131_s17, %s2501_s23  ;;  %s2507_s30 = scalar_lea.vmem %s2506_s27, 256 }
 0x21f   : > { %1834 = vmatmul.mubr.f32.vlgmr.msra.gmra.mrb[0].mxu0 %v730_v7  ;;  %1869 = vmatmul.mubr.f32.vlgmr.msra.gmra.mrb[0].mxu1 %v730_v7  ;;  %p2508_p0 = scmp.lt.s32.totalorder %s3131_s17, %s2506_s27  ;;  %p2509_p7 = scmp.lt.s32.totalorder %s2507_s30, %s2501_s23 }
 0x220   : > { %2071 = vmatpush3.bf16.msra.mxu0 %v2070_v6  ;;  %1903 = vmatprep.mubr.msk.f32.mxu0 %vm2607_vm1, %v2608_v44  ;;  %v2106_v6 = vpack.c.bf16 %v1174_v5, %v1173_v3  ;;  %v1688_v3 = vld [vmem:[%s3237_s4] ss:$0 sm:$0xff]  ;;  %s3241_s4 = sld [smem:[#allocation35_spill]]  ;;  %p2503_p10 = pnand %p2502_p2, %p3242_p9 }
 0x221   : > { %2072 = vmatprep.subr.bf16.mxu0 %v2606_v4  ;;  %1913 = vmatprep.mubr.msk.f32.mxu1 %vm2607_vm1, %v2608_v44  ;;  %p2510_p5 = por %p2509_p7, %p2508_p0 }
 0x222   : > { %p2504_p1 = pneg %p2503_p10 }
 0x224   : > { %2074 = vmatpush3.bf16.msra.mxu0 %v2073_v10  ;;  %v1177_v10 = vld [vmem:[#allocation13 + $0x60] sm:$0xff]  ;;  %p2511_p8 = pnand %p2510_p5, %p2504_p1 }
 0x225   : > { %2075 = vmatprep.subr.bf16.mxu0 %v2606_v4  ;;  %v2112_v12 = vpack.c.bf16 %v1178_v11, %v1177_v10  ;;  %v1398_v10 = vld [vmem:[#allocation16 + $0x40] sm:$0xff]  ;;  %v1399_v11 = vld [vmem:[#allocation16 + $0x48] sm:$0xff] }
 0x226   : > { %s3129_s14 = scalar_lea.hbm %s3241_s4, %s1692_s10 }
 0x228   : > { %2077 = vmatpush3.bf16.msra.mxu0 %v2076_v13  ;;  %v1179_v13 = vld [vmem:[#allocation13 + $0x70] sm:$0xff] }
 0x229   : > { %2078 = vmatprep.subr.bf16.mxu0 %v2606_v4  ;;  %v2115_v15 = vpack.c.bf16 %v1180_v14, %v1179_v13  ;;  %v1400_v13 = vld [vmem:[#allocation16 + $0x50] sm:$0xff]  ;;  %v1401_v14 = vld [vmem:[#allocation16 + $0x58] sm:$0xff] }
 0x22c   : > { %2080 = vmatpush3.bf16.msra.mxu0 %v2079_v16 }
 0x22d   : > { %2081 = vmatprep.subr.bf16.mxu0 %v2606_v4 }
 0x230   : > { %2083 = vmatpush3.bf16.msra.mxu0 %v2082_v19 }
 0x231   : > { %2084 = vmatprep.subr.bf16.mxu0 %v2606_v4 }
 0x234   : > { %2086 = vmatpush3.bf16.msra.mxu0 %v2085_v23 }
 0x235   : > { %2087 = vmatprep.subr.bf16.mxu0 %v2606_v4 }
 0x238   : > { %2089 = vmatpush3.bf16.msra.mxu0 %v2088_v26  ;;  %v1293_v26 = vld [vmem:[#allocation14 + $0x10] sm:$0xff] }
 0x239   : > { %2090 = vmatprep.subr.bf16.mxu0 %v2606_v4 }
 0x23c   : > { %2092 = vmatpush3.bf16.msra.mxu0 %v2091_v29  ;;  %v2121_v29 = vpack.c.bf16 %v1294_v28, %v1293_v26 }
 0x23d   : > { %1906 = vmatprep.subr.mxu0 %v2608_v44 }
 0x23f   : > { %1904 = vmatmul.mubr.f32.vlgmr.msra.gmra.mrb[2].mxu0 %v730_v7  ;;  %v1175_v7 = vld [vmem:[#allocation13 + $0x50] sm:$0xff] }
 0x240   : > { %1908 = vmatprep.mubr.msk.f32.mxu0 %vm2607_vm1, %v2608_v44  ;;  %v2109_v9 = vpack.c.bf16 %v1176_v8, %v1175_v7  ;;  %v1396_v7 = vld [vmem:[#allocation16 + $0x30] sm:$0xff]  ;;  %v1397_v8 = vld [vmem:[#allocation16 + $0x38] sm:$0xff] }
 0x2f2   : > { %v820_v31 = vpop.f32.mrb[0].mxu0  ;;  %v913_v32 = vpop.f32.mrb[0].mxu1 }
 0x2f3   : > { %v914_v34 = vadd.f32 %v1683_v30, %v913_v32  ;;  %v1835_v35 = vpop.f32.mrb[1].mxu0  ;;  %v1870_v36 = vpop.f32.mrb[1].mxu1  ;;  %v821_v37 = vadd.f32 %v1682_v33, %v820_v31  ;;  %v1296_v30 = vld [vmem:[#allocation14 + $0x28] sm:$0xff] }
 0x2f4   : > { %v1297_v36 = vld [vmem:[#allocation14 + $0x30] sm:$0xff] }
 0x2f5   : > { %1907 = vmatpush3.xpose.msra.mxu0 %v914_v34 }
 0x2f6   : > { %2117 = vmatprep.subr.bf16.mxu0 %v2606_v4 }
 0x2f8   : > { %1909 = vmatmul.mubr.f32.vlgmr.msra.gmra.mrb[4].mxu0 %v821_v37  ;;  %v1298_v37 = vld [vmem:[#allocation14 + $0x38] sm:$0xff] }
 0x2f9   : > { %1983 = vmatprep.mubr.msk.f32.mxu0 %vm2607_vm1, %v2608_v44  ;;  %2119 = vmatpush3.bf16.msra.mxu0 %v2118_v27 }
 0x2fa   : > { %2120 = vmatprep.subr.bf16.mxu0 %v2606_v4 }
 0x2fd   : > { %2122 = vmatpush3.bf16.msra.mxu0 %v2121_v29 }
 0x2fe   : > { %2123 = vmatprep.subr.bf16.mxu0 %v2606_v4 }
 0x312   : > { %v1006_v39 = vpop.f32.mrb[2].mxu0 }
 0x313   : > { %v1007_v40 = vadd.f32 %v1684_v38, %v1006_v39  ;;  %v1905_v41 = vpop.f32.mrb[3].mxu0  ;;  %v2127_v38 = vpack.c.bf16 %v1298_v37, %v1297_v36  ;;  %v1299_v39 = vld [vmem:[#allocation14 + $0x40] sm:$0xff] }
 0x314   : > { %v1301_v41 = vld [vmem:[#allocation14 + $0x50] sm:$0xff] }
 0x315   : > { %1912 = vmatpush3.msra.mxu1 %v1007_v40  ;;  %v1300_v40 = vld [vmem:[#allocation14 + $0x48] sm:$0xff] }
 0x316   : > { %2093 = vmatprep.subr.bf16.mxu1 %v2606_v4 }
 0x3cb   : > { %v1076_v42 = vpop.f32.mrb[4].mxu0 }
 0x3cc   : > { %v1910_v43 = vpop.f32.mrb[5].mxu0  ;;  %v1081_v45 = vsel %vm1080_vm2, %v1076_v42, -inf }
 0x3cd   : > { %1082 = vmax.xlane.f32.xlu1 %v1081_v45  ;;  %v1302_v43 = vld [vmem:[#allocation14 + $0x58] sm:$0xff] }
 0x3ce   : > { %v2133_v45 = vpack.c.bf16 %v1302_v43, %v1301_v41 }
 0x45a   : > { %v1083_v46 = vpop.xlane.xlu1 %1082 }
 0x45b   : > { %v1084_v47 = vsub.f32 %v1076_v42, %v1083_v46  ;;  %v2130_v42 = vpack.c.bf16 %v1300_v40, %v1299_v39  ;;  %v1303_v46 = vld [vmem:[#allocation14 + $0x60] sm:$0xff] }
 0x45d   : > { %v1085_v48 = vmul.f32 1.442695, %v1084_v47  ;;  %v2136_v47 = vpack.c.bf16 %v1304_v21, %v1303_v46 }
 0x45f   : > { %2295 = vpow2.f32 %v1085_v48  ;;  %v1305_v48 = vld [vmem:[#allocation14 + $0x70] sm:$0xff] }
 0x469   : > { %v2296_v49 = vpop.eup %2295 }
 0x46a   : > { %v1087_v50 = vsel %vm1080_vm2, %v2296_v49, 0.0 }
 0x46b   : > { %1088 = vadd.xlane.f32.xlu1 %v1087_v50 }
 0x4f8   : > { %v1089_v51 = vpop.xlane.xlu1 %1088 }
 0x4f9   : > { %2297 = vrcp.f32 %v1089_v51  ;;  %v1390_v51 = vld [vmem:[#allocation16] sm:$0xff] }
 0x503   : > { %v2298_v54 = vpop.eup %2297 }
 0x504   : > { %v1091_v56 = vmul.f32 %v2298_v54, %v2296_v49  ;;  %v1306_v49 = vld [vmem:[#allocation14 + $0x78] sm:$0xff]  ;;  %v2142_v54 = vpack.c.bf16 %v1391_v52, %v1390_v51 }
 0x505   : > { %v2139_v50 = vpack.c.bf16 %v1306_v49, %v1305_v48 }
 0x506   : > { %1914 = vmatmul.mubr.msk.f32.vlgmr.msra.gmra.mrb[2].mxu1 %vm1080_vm2, %v1091_v56 }
 0x507   : > { %2095 = vmatpush3.bf16.msra.mxu1 %v2094_v55  ;;  %1948 = vmatprep.mubr.msk.f32.mxu1 %vm2607_vm1, %v2608_v44  ;;  %v1393_v55 = vld [vmem:[#allocation16 + $0x18] sm:$0xff] }
 0x508   : > { %2096 = vmatprep.subr.bf16.mxu1 %v2606_v4  ;;  %v2145_v56 = vpack.c.bf16 %v1393_v55, %v1392_v53 }
 0x50b   : > { %2098 = vmatpush3.bf16.msra.mxu1 %v2097_v59  ;;  %v2148_v59 = vpack.c.bf16 %v1395_v58, %v1394_v57 }
 0x50c   : > { %2099 = vmatprep.subr.bf16.mxu1 %v2606_v4 }
 0x50f   : > { %2101 = vmatpush3.bf16.msra.mxu1 %v2100_v62 }
 0x510   : > { %2102 = vmatprep.subr.bf16.mxu1 %v2606_v4 }
 0x513   : > { %2104 = vmatpush3.bf16.msra.mxu1 %v2103_v2 }
 0x514   : > { %2105 = vmatprep.subr.bf16.mxu1 %v2606_v4 }
 0x517   : > { %2107 = vmatpush3.bf16.msra.mxu1 %v2106_v6 }
 0x518   : > { %2108 = vmatprep.subr.bf16.mxu1 %v2606_v4 }
 0x51b   : > { %2110 = vmatpush3.bf16.msra.mxu1 %v2109_v9  ;;  %v2151_v9 = vpack.c.bf16 %v1397_v8, %v1396_v7 }
 0x51c   : > { %2111 = vmatprep.subr.bf16.mxu1 %v2606_v4 }
 0x51f   : > { %2113 = vmatpush3.bf16.msra.mxu1 %v2112_v12  ;;  %v2154_v12 = vpack.c.bf16 %v1399_v11, %v1398_v10 }
 0x520   : > { %2114 = vmatprep.subr.bf16.mxu1 %v2606_v4 }
 0x523   : > { %2116 = vmatpush3.bf16.msra.mxu1 %v2115_v15  ;;  %v2157_v15 = vpack.c.bf16 %v1401_v14, %v1400_v13 }
 0x524   : > { %2141 = vmatprep.subr.bf16.mxu1 %v2606_v4 }
 0x5d9   : > { %v1161_v16 = vpop.f32.mrb[2].mxu1 }
 0x5da   : > { %v1915_v17 = vpop.f32.mrb[3].mxu1  ;;  %1949 = vmatmul.mubr.f32.vlgmr.msra.gmra.mrb[4].mxu1 %v1161_v16  ;;  %v1402_v16 = vld [vmem:[#allocation16 + $0x60] sm:$0xff] }
 0x5db   : > { %2018 = vmatprep.mubr.msk.f32.mxu1 %vm2607_vm1, %v2608_v44  ;;  %v1295_v44 = vld [vmem:[#allocation14 + $0x20] sm:$0xff]  ;;  %2143 = vmatpush3.bf16.msra.mxu1 %v2142_v54  ;;  %v1403_v17 = vld [vmem:[#allocation16 + $0x68] sm:$0xff] }
 0x5dc   : > { %v2124_v31 = vpack.c.bf16 %v1296_v30, %v1295_v44  ;;  %2144 = vmatprep.subr.bf16.mxu1 %v2606_v4 }
 0x5de   : > { %2125 = vmatpush3.bf16.msra.mxu0 %v2124_v31 }
 0x5df   : > { %2126 = vmatprep.subr.bf16.mxu0 %v2606_v4  ;;  %2146 = vmatpush3.bf16.msra.mxu1 %v2145_v56 }
 0x5e0   : > { %2147 = vmatprep.subr.bf16.mxu1 %v2606_v4 }
 0x5e2   : > { %2128 = vmatpush3.bf16.msra.mxu0 %v2127_v38 }
 0x5e3   : > { %2129 = vmatprep.subr.bf16.mxu0 %v2606_v4  ;;  %2149 = vmatpush3.bf16.msra.mxu1 %v2148_v59 }
 0x5e4   : > { %2150 = vmatprep.subr.bf16.mxu1 %v2606_v4 }
 0x5e6   : > { %2131 = vmatpush3.bf16.msra.mxu0 %v2130_v42 }
 0x5e7   : > { %2132 = vmatprep.subr.bf16.mxu0 %v2606_v4  ;;  %2152 = vmatpush3.bf16.msra.mxu1 %v2151_v9 }
 0x5e8   : > { %2153 = vmatprep.subr.bf16.mxu1 %v2606_v4 }
 0x5ea   : > { %2134 = vmatpush3.bf16.msra.mxu0 %v2133_v45 }
 0x5eb   : > { %2135 = vmatprep.subr.bf16.mxu0 %v2606_v4  ;;  %2155 = vmatpush3.bf16.msra.mxu1 %v2154_v12 }
 0x5ec   : > { %2156 = vmatprep.subr.bf16.mxu1 %v2606_v4 }
 0x5ee   : > { %2137 = vmatpush3.bf16.msra.mxu0 %v2136_v47 }
 0x5ef   : > { %2138 = vmatprep.subr.bf16.mxu0 %v2606_v4  ;;  %2158 = vmatpush3.bf16.msra.mxu1 %v2157_v15 }
 0x5f0   : > { %2159 = vmatprep.subr.bf16.mxu1 %v2606_v4 }
 0x5f2   : > { %2140 = vmatpush3.bf16.msra.mxu0 %v2139_v50 }
 0x6ad   : > { %v1254_v19 = vpop.f32.mrb[4].mxu1 }
 0x6ae   : > { %v1255_v20 = vadd.f32 %v1686_v18, %v1254_v19  ;;  %v1950_v22 = vpop.f32.mrb[5].mxu1  ;;  %v2160_v18 = vpack.c.bf16 %v1403_v17, %v1402_v16  ;;  %v1404_v19 = vld [vmem:[#allocation16 + $0x70] sm:$0xff] }
 0x6b0   : > { %v3090_v23 = vadd.f32 %v1255_v20, %v3002_v0  ;;  %2161 = vmatpush3.bf16.msra.mxu1 %v2160_v18  ;;  %v1405_v20 = vld [vmem:[#allocation16 + $0x78] sm:$0xff] }
 0x6b1   : > { %2162 = vmatprep.subr.bf16.mxu1 %v2606_v4  ;;  %v2163_v22 = vpack.c.bf16 %v1405_v20, %v1404_v19 }
 0x6b2   : > { %1262 = vadd.xlane.f32.xlu0 %v3090_v23 }
 0x6b4   : > { %2164 = vmatpush3.bf16.msra.mxu1 %v2163_v22 }
 0x73f   : > { %v1263_v0 = vpop.xlane.xlu0 %1262 }
 0x740   : > { %v1264_v32 = vmul.f32 0.03125, %v1263_v0  ;;  %v1690_v0 = vld [vmem:[%s3240_s3] ss:$0 sm:$0xff] }
 0x742   : > { %v1265_v33 = vsub.f32 %v3090_v23, %v1264_v32 }
 0x744   : > { %v1266_v34 = vsel %vm695_vm0, %v1265_v33, 0.0 }
 0x745   : > { %v1267_v35 = vmul.f32 %v1266_v34, %v1266_v34 }
 0x747   : > { %1268 = vadd.xlane.f32.xlu1 %v1267_v35 }
 0x7d4   : > { %v1269_v60 = vpop.xlane.xlu1 %1268 }
 0x7d5   : > { %v1270_v61 = vmul.f32 0.03125, %v1269_v60 }
 0x7d7   : > { %v1271_v62 = vadd.f32 1e-05, %v1270_v61 }
 0x7d9   : > { %2299 = vrsqrt.f32 %v1271_v62 }
 0x7e3   : > { %v2300_v63 = vpop.eup %2299 }
 0x7e4   : > { %v1273_v2 = vmul.f32 %v2300_v63, %v1266_v34 }
 0x7e6   : > { %v1280_v5 = vmul.f32 %v1687_v1, %v1273_v2 }
 0x7e8   : > { %v1287_v6 = vadd.f32 %v1688_v3, %v1280_v5 }
 0x7ea   : > { %1984 = vmatmul.mubr.f32.vlgmr.msra.gmra.mrb[6].mxu0 %v1287_v6 }
 0x8bd   : > { %v1380_v25 = vpop.f32.mrb[6].mxu0 }
 0x8be   : > { %v1381_v26 = vadd.f32 %v1689_v24, %v1380_v25  ;;  %v1985_v27 = vpop.f32.mrb[7].mxu0 }
 0x8c0   : > { %v1385_v28 = vmul.f32 0.70710677, %v1381_v26  ;;  %v1384_v44 = vmul.f32 0.5, %v1381_v26 }
 0x8c2   : > { %2301 = verf.f32 %v1385_v28 }
 0x8cc   : > { %v2302_v29 = vpop.eup %2301 }
 0x8cd   : > { %v1387_v30 = vadd.f32 1.0, %v2302_v29 }
 0x8cf   : > { %v1388_v4 = vmul.f32 %v1387_v30, %v1384_v44 }
 0x8d1   : > { %2019 = vmatmul.mubr.f32.vlgmr.msra.gmra.mrb[6].mxu1 %v1388_v4 }
 0x9a4   : > { %v1472_v31 = vpop.f32.mrb[6].mxu1 }
 0x9a5   : > { %v1483_v32 = vadd.f32 %v1472_v31, %v3090_v23  ;;  %v2020_v33 = vpop.f32.mrb[7].mxu1 }
 0x9a7   : > { %v1491_v34 = vadd.f32 %v1690_v0, %v1483_v32 }
 0x9a9   : > { %1492 = vst [vmem:[%s688_s0] sm:$0xff] %v1491_v34 }
 0x9aa   : > { %2514 = shalt.err (!%p2511_p8)
}
 0x9ab   : > { %s2515_s7 = scalar_lea.hbm %s3129_s14, 128  ;;  %s2519_s10 = scalar_lea.hbm %s3241_s4, 256 }
 0x9ac   : > { %p2516_p3 = scmp.ne.s32.totalorder %s3129_s14, %s2515_s7  ;;  %p2520_p13 = scmp.lt.u32.totalorder %s3129_s14, %s3241_s4 }
 0x9ad   : > { %p2521_p12 = scmp.lt.u32.totalorder %s2519_s10, %s2515_s7  ;;  %p2523_p2 = scmp.lt.u32.totalorder %s2515_s7, %s3129_s14 }
 0x9ae   : > { %p2517_p11 = pnand %p2516_p3, %p3242_p9 }
 0x9af   : > { %p2522_p4 = por %p2521_p12, %p2520_p13 }
 0x9b0   : > { %p2518_p6 = pneg %p2517_p11 }
 0x9b1   : > { %p2524_p10 = por %p2523_p2, %p2522_p4 }
 0x9b3   : > { %p2525_p1 = pnand %p2524_p10, %p2518_p6 }
 0x9b5   : > { %2528 = shalt.err (!%p2525_p1)
}
 0x9b6   : > { %2191 = dma.vmem_to_hbm [thread:$0]  (%p3242_p9), %s3131_s17, 128, %s3129_s14, %s1494_s1  }
 0x9b7 PF: > { %s1519_s21 = sand.u32 1, %s2575_s24   ;;  %p3243_p0 = scmp.ne.s32.totalorder %s3227_s19, 0 }
 0x9b8   : > { %p3244_p7 = scmp.ge.s32.totalorder %s2595_s29, 2  ;;  %s1520_s23 = scalar_lea.sflag [#allocation7], %s1519_s21 }
 0x9ba   : > { %p2217_p5 = pnand %p3244_p7, %p3243_p0 }
 0x9bc   : > { %2570 = dma.done.wait (!%p2217_p5), %s1520_s23, 128  }
 0x9bd   : > { %2572 = vsyncadd (!%p2217_p5), %s1520_s23, 4294967168  ;;  %s36_s29 = sadd.s32 1, %s2595_s29   ;;  %s3245_s24 = smov %s2579_s25 }
 0x9be   : > { %p33_p8 = scmp.ge.s32.totalorder %s36_s29, 4   ;;  %s3246_s25 = smov %s2583_s26 }
 0x9bf   : > { %s3247_s26 = smov %s2930_s12  ;;  %s3248_s27 = smov %s2591_s28 }
 0x9c0   : > { %s3249_s28 = smov %s3251_s20  ;;  %35 = sbr.rel (!%p33_p8) target bundleno = 22 (0x16), region = 170 }
 0x9c7   :  { %1525 = vsyncpa [#allocation6], 1 }
 0x9c8   :  { %1527 = vsyncpa [#allocation6 + $0x1], 1 }
 0x9c9   :  { %1528 = vsyncpa [#allocation9], 1 }
 0x9ca   :  { %1529 = vsyncpa [#allocation12], 1 }
 0x9cb   :  { %1530 = vsyncpa [#allocation15], 1 }
 0x9cc   :  { %1531 = vsyncpa [#allocation7], 1 }
 0x9cd   :  { %1533 = vsyncpa [#allocation7 + $0x1], 1 }

</bundles_post_ra>
